<compile_context>
chip_gen: v7x
topology: tpu7x:2x2x1
jax: 0.10.0
libtpu: 0.0.40
codegen_flags: <defaults>
</compile_context>

<pallas_src>
import numpy as np
import jax
import jax.numpy as jnp
from jax import lax
from jax.experimental import pallas as pl
from jax.experimental.pallas import tpu as pltpu


_T_CHUNK_MAX = 16  # max time steps per grid iteration in the recurrent kernel


# ----------------------------------------------------------------------------
# small helpers
# ----------------------------------------------------------------------------
def _round_up(x, m):
    return ((x + m - 1) // m) * m


def _largest_aligned_divisor(n, align, cap):
    """Largest d <= cap with d % align == 0 and n % d == 0 (n multiple of align)."""
    best = align
    d = align
    limit = min(n, cap)
    while d <= limit:
        if n % d == 0:
            best = d
        d += align
    return best


def _bytes(shape, dtype):
    return int(np.prod(shape)) * jnp.dtype(dtype).itemsize


def _tpu_hw_info():
    """(physical VMEM bytes per TensorCore, # TensorCores per chip) — best effort."""
    vmem_cap, num_cores = 128 << 20, 1
    kind = ""
    try:
        kind = jax.devices()[0].device_kind.lower()
    except Exception:
        pass
    if "v7" in kind:
        vmem_cap, num_cores = 64 << 20, 2
    try:  # prefer the exact number when the query is available
        cap = int(getattr(pltpu.get_tpu_info(), "vmem_capacity_bytes", 0) or 0)
        if cap > 0:
            vmem_cap = cap
    except Exception:
        pass
    return vmem_cap, num_cores


def _vmem_limit(used_bytes, cap_bytes):
    # used_bytes already counts double-buffered blocks + scratch.
    return int(min(max(used_bytes + (4 << 20), 16 << 20), cap_bytes))


# ----------------------------------------------------------------------------
# Kernel 1: sequential LSTM recurrence. Grid = (batch shards, time chunks).
# Only h @ W_hh runs on the MXU per step; the input projection (+ fused bias)
# is precomputed as gates_x. h/c are carried in f32 VMEM scratch across the
# sequential time-chunk axis; the batch-shard axis is "parallel" (v7x 2 TCs).
# ----------------------------------------------------------------------------
def _lstm_recurrent_kernel(gx_ref,       # (Tc, Bsh, 4Hp) f32/bf16 : x@W_ih^T + b
                           w_hh_ref,     # (Hp, 4Hp)      weight dtype
                           h_out_ref,    # (Tc, Bsh, Hp)  per-step hidden out
                           h_sc, c_sc):  # VMEM (Bsh, Hp) f32 carried state
    tc = pl.program_id(1)

    @pl.when(tc == 0)
    def _():
        # forward() zeroes h, c right after init_hidden_state()
        h_sc[...] = jnp.zeros_like(h_sc)
        c_sc[...] = jnp.zeros_like(c_sc)

    t_chunk = gx_ref.shape[0]
    Hp = h_sc.shape[1]
    w_hh = w_hh_ref[...]

    def sigmoid(z):
        # one EUP tanh instead of exp + divide (mathematically identical)
        return 0.5 * (jnp.tanh(0.5 * z) + 1.0)

    def step(t, carry):
        h, c = carry                                           # f32 (Bsh, Hp)
        gates = gx_ref[t].astype(jnp.float32) + jnp.dot(
            h.astype(w_hh.dtype), w_hh, preferred_element_type=jnp.float32)
        # Hp is a multiple of 128 → lane-aligned (free) slices; gate order i,f,g,o
        i_g = sigmoid(gates[:, 0 * Hp:1 * Hp])
        f_g = sigmoid(gates[:, 1 * Hp:2 * Hp])
        g_g = jnp.tanh(gates[:, 2 * Hp:3 * Hp])
        o_g = sigmoid(gates[:, 3 * Hp:4 * Hp])
        c_new = f_g * c + i_g * g_g
        h_new = o_g * jnp.tanh(c_new)
        # write the per-step hidden state (vocab FC + masking happen in pass 2)
        h_out_ref[t] = h_new.astype(h_out_ref.dtype)
        # NOTE: no shrinking-batch freeze here. Lengths are sorted descending so
        # rows never re-activate, and the FC pass zeroes every inactive
        # (row, step) output — letting finished rows keep evolving is harmless
        # and removes ~6 VPU ops plus one DMA stream from the serial loop.
        return (h_new, c_new)

    h_f, c_f = lax.fori_loop(0, t_chunk, step, (h_sc[...], c_sc[...]),
                             unroll=True)
    h_sc[...] = h_f
    c_sc[...] = c_f


def _lstm_recurrence(gates_x, w_hh_t, *, h_dtype, b_shard, t_chunk,
                     vmem_cap_budget):
    T_pad, B_pad, G = gates_x.shape
    H_pad = w_hh_t.shape[0]
    grid = (B_pad // b_shard, T_pad // t_chunk)

    used = (2 * _bytes((t_chunk, b_shard, G), gates_x.dtype)
            # TODO(synk): pipeline_mode=pl.Buffered(1) would single-buffer this
            # constant-index w_hh block (helps v7x's 64 MiB VMEM); omitted to
            # stay on the most portable BlockSpec path.
            + 2 * _bytes((H_pad, G), w_hh_t.dtype)
            + 2 * _bytes((t_chunk, b_shard, H_pad), h_dtype)
            + 2 * _bytes((b_shard, H_pad), jnp.float32))

    grid_spec = pltpu.PrefetchScalarGridSpec(
        num_scalar_prefetch=0,
        grid=grid,
        in_specs=[
            pl.BlockSpec((t_chunk, b_shard, G), lambda bs, tc: (tc, bs, 0)),
            pl.BlockSpec((H_pad, G), lambda bs, tc: (0, 0)),
        ],
        out_specs=pl.BlockSpec((t_chunk, b_shard, H_pad),
                               lambda bs, tc: (tc, bs, 0)),
        scratch_shapes=[pltpu.VMEM((b_shard, H_pad), jnp.float32),
                        pltpu.VMEM((b_shard, H_pad), jnp.float32)],
    )
    return pl.pallas_call(
        _lstm_recurrent_kernel,
        out_shape=jax.ShapeDtypeStruct((T_pad, B_pad, H_pad), h_dtype),
        grid_spec=grid_spec,
        compiler_params=pltpu.CompilerParams(
            # batch shards may land on different TensorCores (v7x megacore);
            # the time axis carries h/c and must stay sequential.
            # TODO(synk): pltpu.CORE_PARALLEL on the shard axis may split more
            # reliably across v7x cores; kept "parallel" for portability.
            dimension_semantics=("parallel", "arbitrary"),
            vmem_limit_bytes=_vmem_limit(used, vmem_cap_budget)),
    )(gates_x, w_hh_t)


# ----------------------------------------------------------------------------
# Kernel 2: hoisted vocab projection, tiled (B*T, H) @ (H, V) with lane-dense
# V tiles; applies the shrinking-batch mask so inactive (row, step) entries
# are exactly zero like the PyTorch `predictions[:bt, t+1] = preds`.
# ----------------------------------------------------------------------------
def _fc_kernel(h_ref, m_ref, w_ref, b_ref, out_ref):
    acc = jnp.dot(h_ref[...], w_ref[...], preferred_element_type=jnp.float32)
    out_ref[...] = ((acc + b_ref[...]) * m_ref[...]).astype(out_ref.dtype)


def _fc_projection(h_flat, mask_flat, w_fc_t, b_fc, *, tm, tn, vmem_cap_budget):
    R, H_pad = h_flat.shape
    V_pad = w_fc_t.shape[1]
    # Vocab axis innermost: the (tm, H_pad) h tile stays resident while w_fc
    # streams through it. tm is sized as large as VMEM allows (often tm == R),
    # so w_fc is re-streamed at most R/tm (usually 1) time(s).
    grid = (R // tm, V_pad // tn)

    used = 2 * (_bytes((tm, H_pad), h_flat.dtype)
                + _bytes((tm, 1), mask_flat.dtype)
                + _bytes((H_pad, tn), w_fc_t.dtype)
                + _bytes((1, tn), b_fc.dtype)
                + _bytes((tm, tn), jnp.float32))

    grid_spec = pltpu.PrefetchScalarGridSpec(
        num_scalar_prefetch=0,
        grid=grid,
        in_specs=[
            pl.BlockSpec((tm, H_pad), lambda i, j: (i, 0)),
            pl.BlockSpec((tm, 1), lambda i, j: (i, 0)),
            pl.BlockSpec((H_pad, tn), lambda i, j: (0, j)),
            pl.BlockSpec((1, tn), lambda i, j: (0, j)),
        ],
        out_specs=pl.BlockSpec((tm, tn), lambda i, j: (i, j)),
    )
    return pl.pallas_call(
        _fc_kernel,
        out_shape=jax.ShapeDtypeStruct((R, V_pad), jnp.float32),
        grid_spec=grid_spec,
        compiler_params=pltpu.CompilerParams(
            dimension_semantics=("parallel", "parallel"),
            vmem_limit_bytes=_vmem_limit(used, vmem_cap_budget)),
    )(h_flat, mask_flat, w_fc_t, b_fc)


# ----------------------------------------------------------------------------
# Parameter init (deterministic, mirrors nn.Module shapes / init ranges).
# ----------------------------------------------------------------------------
def init_params(key, vocab_size, embed_dim, decoder_dim, encoder_dim):
    assert embed_dim == encoder_dim, "forward() requires embed_dim == encoder_dim"
    ks = jax.random.split(key, 6)
    H, D, V = decoder_dim, embed_dim, vocab_size
    k = 1.0 / np.sqrt(H)
    params = {
        # nn.Embedding(vocab, embed), uniform(-0.1, 0.1)
        "embedding": jax.random.uniform(ks[0], (V, D), jnp.float32, -0.1, 0.1),
        # nn.LSTMCell(embed, decoder): weight_ih (4H, D), weight_hh (4H, H),
        # biases (4H,), uniform(-1/sqrt(H), 1/sqrt(H)); gate order i, f, g, o.
        "w_ih": jax.random.uniform(ks[1], (4 * H, D), jnp.float32, -k, k),
        "w_hh": jax.random.uniform(ks[2], (4 * H, H), jnp.float32, -k, k),
        "b_ih": jax.random.uniform(ks[3], (4 * H,), jnp.float32, -k, k),
        "b_hh": jax.random.uniform(ks[4], (4 * H,), jnp.float32, -k, k),
        # nn.Linear(decoder, vocab): weight uniform(-0.1, 0.1), bias 0
        "w_fc": jax.random.uniform(ks[5], (V, H), jnp.float32, -0.1, 0.1),
        "b_fc": jnp.zeros((V,), jnp.float32),
    }
    return params


# ----------------------------------------------------------------------------
# Weight padding / re-layout: gate blocks are re-placed at H_pad strides so
# gate slices inside the kernel are lane-aligned; padded rows/cols are zero,
# which keeps padded hidden channels exactly 0 through the recurrence.
# ----------------------------------------------------------------------------
def _prepare_weights(params, H, H_pad, V, V_pad, weight_dtype):
    w_ih = params["w_ih"]                        # (4H, D)
    w_hh = params["w_hh"]                        # (4H, H)
    b = params["b_ih"] + params["b_hh"]          # (4H,)
    D = w_ih.shape[1]

    w_ih_p = jnp.zeros((4 * H_pad, D), jnp.float32)
    w_hh_p = jnp.zeros((4 * H_pad, H_pad), jnp.float32)
    b_p = jnp.zeros((4 * H_pad,), jnp.float32)
    for g in range(4):
        w_ih_p = w_ih_p.at[g * H_pad:g * H_pad + H, :].set(w_ih[g * H:(g + 1) * H])
        w_hh_p = w_hh_p.at[g * H_pad:g * H_pad + H, :H].set(w_hh[g * H:(g + 1) * H])
        b_p = b_p.at[g * H_pad:g * H_pad + H].set(b[g * H:(g + 1) * H])

    w_fc_t = jnp.zeros((H_pad, V_pad), jnp.float32)
    w_fc_t = w_fc_t.at[:H, :V].set(jnp.transpose(params["w_fc"]))
    b_fc = jnp.zeros((1, V_pad), jnp.float32).at[0, :V].set(params["b_fc"])

    return (jnp.transpose(w_ih_p).astype(weight_dtype),   # (D, 4Hp)
            jnp.transpose(w_hh_p).astype(weight_dtype),   # (Hp, 4Hp)
            b_p,                                          # (4Hp,)  f32
            w_fc_t.astype(weight_dtype),                  # (Hp, Vp)
            b_fc)                                         # (1, Vp) f32


# ----------------------------------------------------------------------------
# Full forward (glue in JAX/NumPy, hot paths in the Pallas kernels).
# ----------------------------------------------------------------------------
def decoder_without_attention_forward(params, encoder_out, encoded_captions,
                                      caption_lengths,
                                      weight_dtype=jnp.float32):
    lengths = np.asarray(caption_lengths).reshape(-1)
    sort_ind = np.argsort(-lengths, kind="stable")          # descending sort
    lengths_sorted = lengths[sort_ind]
    decode_lengths = [int(l) for l in lengths_sorted]
    T = int(max(decode_lengths))
    B = int(lengths.shape[0])

    enc = jnp.asarray(encoder_out, jnp.float32)[sort_ind]       # (B, E == D)
    caps = jnp.asarray(encoded_captions)[sort_ind]              # (B, L)
    embeddings = params["embedding"][caps]                      # (B, L, D)

    D = embeddings.shape[-1]
    H = params["w_hh"].shape[1]
    V = params["w_fc"].shape[0]

    bf16 = jnp.dtype(weight_dtype) == jnp.dtype(jnp.bfloat16)
    sub = 16 if bf16 else 8                     # bf16 min tile is (16, 128)
    B_pad = _round_up(B, sub)
    H_pad = _round_up(H, 128)
    V_pad = _round_up(V, 128)

    # Generation-aware budgets: <= 3/4 of physical VMEM (48 MiB on v7x).
    vmem_cap, num_cores = _tpu_hw_info()
    budget = min(int(vmem_cap * 3 // 4), 100 << 20)

    # Batch sharding: 1 shard on single-TC parts (v5e/v6e), 2 shards on v7x.
    if num_cores >= 2 and B_pad % (2 * sub) == 0:
        shard_cap = B_pad // 2
    else:
        shard_cap = B_pad
    b_shard = _largest_aligned_divisor(B_pad, sub, min(shard_cap, 512))

    # Time chunking; shrink t_chunk / b_shard until the blocks fit the budget.
    gx_dtype = weight_dtype if bf16 else jnp.float32
    h_dtype = weight_dtype
    t_chunk = min(_T_CHUNK_MAX, _round_up(T, 8))

    def _rec_bytes(tc_, bs_):
        return (2 * _bytes((tc_, bs_, 4 * H_pad), gx_dtype)
                + 2 * _bytes((H_pad, 4 * H_pad), weight_dtype)
                + 2 * _bytes((tc_, bs_, H_pad), h_dtype)
                + 2 * _bytes((bs_, H_pad), jnp.float32)
                + (4 << 20))

    while _rec_bytes(t_chunk, b_shard) > budget and t_chunk > 8:
        t_chunk = max(8, t_chunk // 2)
    while _rec_bytes(t_chunk, b_shard) > budget and b_shard > sub:
        b_shard = _largest_aligned_divisor(B_pad, sub, max(sub, b_shard // 2))
    T_pad = _round_up(T, t_chunk)

    w_ih_t, w_hh_t, b_p, w_fc_t, b_fc = _prepare_weights(
        params, H, H_pad, V, V_pad, weight_dtype)

    # Step inputs, time-major: step 0 (torch t == -1) uses encoder_out,
    # step s >= 1 uses embeddings[:, s-1, :].
    x = jnp.concatenate([enc[:, None, :], embeddings[:, :T - 1, :]], axis=1)
    x = jnp.transpose(x, (1, 0, 2))                              # (T, B, D)
    x_p = jnp.zeros((T_pad, B_pad, D), jnp.float32).at[:T, :B].set(x)

    # Hoisted input projection + fused bias: one large MXU matmul (XLA-tiled),
    # f32 accumulation. Only h @ w_hh stays inside the recurrent kernel. On the
    # bf16 path gates_x is stored in bf16 (dominant HBM stream of pass 1).
    gx = jnp.dot(x_p.reshape(T_pad * B_pad, D).astype(weight_dtype), w_ih_t,
                 preferred_element_type=jnp.float32) + b_p[None, :]
    gates_x = gx.astype(gx_dtype).reshape(T_pad, B_pad, 4 * H_pad)

    # Pass 1: sequential recurrence → per-step hidden states (T_pad, B_pad, H_pad)
    h_all = _lstm_recurrence(gates_x, w_hh_t, h_dtype=h_dtype,
                             b_shard=b_shard, t_chunk=t_chunk,
                             vmem_cap_budget=budget)

    # Re-layout the SMALL hidden tensor (T*B*H) to B-major so the FC output is
    # already (B_pad*T_pad, V_pad) row-major and no transpose of the large
    # prediction tensor (T*B*V) is needed afterwards.
    h_flat = jnp.transpose(h_all, (1, 0, 2)).reshape(B_pad * T_pad, H_pad)

    # Precomputed (row, step) active mask in B-major order: prediction step s is
    # written for row b iff lengths_sorted[b] > s - 1, i.e. s <= lengths_sorted[b]
    # (PyTorch writes predictions[:batch_size_t, t+1]).
    mask_np = np.zeros((B_pad, T_pad, 1), np.float32)
    for b in range(B):
        mask_np[b, :min(int(lengths_sorted[b]) + 1, T), 0] = 1.0
    mask_flat = jnp.asarray(mask_np).reshape(B_pad * T_pad, 1)

    # FC tiling: tn lane-dense (generation-aware cap), tm as large as fits so
    # w_fc is streamed at most rows/tm (usually 1) time(s).
    rows = B_pad * T_pad
    tn = _largest_aligned_divisor(V_pad, 128, 512 if budget <= (48 << 20) else 1024)

    def _fc_bytes(tm_, tn_):
        return 2 * (tm_ * H_pad * jnp.dtype(h_dtype).itemsize + tm_ * 4
                    + H_pad * tn_ * jnp.dtype(weight_dtype).itemsize + tn_ * 4
                    + tm_ * tn_ * 4) + (4 << 20)

    tm = _largest_aligned_divisor(rows, sub, min(rows, 4096))
    while _fc_bytes(tm, tn) > budget and tm > sub:
        tm = _largest_aligned_divisor(rows, sub, max(sub, tm // 2))
    while _fc_bytes(tm, tn) > budget and tn > 128:
        tn = _largest_aligned_divisor(V_pad, 128, max(128, tn // 2))

    # Pass 2: masked vocab projection (B_pad*T_pad, H) @ (H, V)
    preds_flat = _fc_projection(h_flat, mask_flat, w_fc_t, b_fc,
                                tm=tm, tn=tn, vmem_cap_budget=budget)

    predictions = preds_flat.reshape(B_pad, T_pad, V_pad)[:B, :T, :V]  # (B,T,V)
    return predictions, caps, decode_lengths, None, jnp.asarray(sort_ind)


# ----------------------------------------------------------------------------
# Pure NumPy reference, mirroring the PyTorch shrinking-batch loop exactly.
# ----------------------------------------------------------------------------
def _reference_forward(params, encoder_out, encoded_captions, caption_lengths):
    p = {k: np.asarray(v) for k, v in params.items()}
    lengths = np.asarray(caption_lengths).reshape(-1)
    sort_ind = np.argsort(-lengths, kind="stable")
    lengths = lengths[sort_ind]
    enc = np.asarray(encoder_out, np.float32)[sort_ind]
    caps = np.asarray(encoded_captions)[sort_ind]
    emb = p["embedding"][caps]
    B = enc.shape[0]
    H = p["w_hh"].shape[1]
    V = p["w_fc"].shape[0]
    decode_lengths = [int(l) for l in lengths]
    T = int(max(decode_lengths))
    h = np.zeros((B, H), np.float32)
    c = np.zeros((B, H), np.float32)
    out = np.zeros((B, T, V), np.float32)

    def sig(z):
        return 1.0 / (1.0 + np.exp(-z))

    for t in range(-1, T - 1):
        btc = int(np.sum(np.asarray(decode_lengths) > t))
        hs, cs = h[:btc], c[:btc]
        xin = enc if t == -1 else emb[:btc, t, :]
        gates = (xin @ p["w_ih"].T + p["b_ih"] + hs @ p["w_hh"].T + p["b_hh"])
        i = sig(gates[:, 0:H]); f = sig(gates[:, H:2 * H])
        g = np.tanh(gates[:, 2 * H:3 * H]); o = sig(gates[:, 3 * H:4 * H])
        c = f * cs + i * g
        h = o * np.tanh(c)
        preds = h @ p["w_fc"].T + p["b_fc"]
        out[:btc, t + 1, :] = preds
    return out, caps, decode_lengths, None, sort_ind


if __name__ == "__main__":
    # small, module-consistent shapes
    B = 4
    encoder_dim = embed_dim = 32     # forward() requires these equal
    decoder_dim = 32
    vocab_size = 64
    max_cap_len = 8

    key = jax.random.PRNGKey(0)
    k_par, k_enc, k_cap = jax.random.split(key, 3)
    params = init_params(k_par, vocab_size, embed_dim, decoder_dim, encoder_dim)

    encoder_out = jax.random.normal(k_enc, (B, encoder_dim), jnp.float32)
    encoded_captions = jax.random.randint(k_cap, (B, max_cap_len), 0, vocab_size,
                                          dtype=jnp.int32)
    caption_lengths = np.array([[5], [7], [3], [6]], dtype=np.int32)

    ref_preds, ref_caps, ref_lens, _, ref_sort = _reference_forward(
        params, np.asarray(encoder_out), np.asarray(encoded_captions),
        caption_lengths)

    # --- f32 path: tight numerical check against the NumPy reference
    preds, caps, dec_lens, alphas, sort_ind = decoder_without_attention_forward(
        params, encoder_out, encoded_captions, caption_lengths,
        weight_dtype=jnp.float32)
    preds = jax.block_until_ready(preds)

    assert preds.shape == ref_preds.shape
    np.testing.assert_allclose(np.asarray(preds), ref_preds, rtol=1e-4, atol=1e-4)
    np.testing.assert_array_equal(np.asarray(caps), ref_caps)
    assert dec_lens == ref_lens
    np.testing.assert_array_equal(np.asarray(sort_ind), ref_sort)

    # --- bf16 weights/activations (halved DMA/VMEM, 2x MXU on v6e/v7x): loose check
    preds_bf16, *_ = decoder_without_attention_forward(
        params, encoder_out, encoded_captions, caption_lengths,
        weight_dtype=jnp.bfloat16)
    preds_bf16 = jax.block_until_ready(preds_bf16)
    np.testing.assert_allclose(np.asarray(preds_bf16), ref_preds,
                               rtol=5e-2, atol=5e-2)

    print("KERNEL_OK")
</pallas_src>

<mosaic_0001>
module attributes {stable_mosaic.version = 11 : i64} {
  func.func @_lstm_recurrent_kernel(%arg0: i32, %arg1: i32, %arg2: memref<8x8x512xf32, #tpu.memory_space<vmem>>, %arg3: memref<128x512xf32, #tpu.memory_space<vmem>>, %arg4: memref<8x8x128xf32, #tpu.memory_space<vmem>>, %arg5: memref<8x128xf32, #tpu.memory_space<vmem>>, %arg6: memref<8x128xf32, #tpu.memory_space<vmem>>) attributes {dimension_semantics = [#tpu.dimension_semantics<parallel>, #tpu.dimension_semantics<arbitrary>], iteration_bounds = array<i64: 1, 1>, scalar_prefetch = 0 : i64, scratch_operands = 2 : i64, tpu.core_type = #tpu.core_type<tc>, window_params = [{transform_indices = @transform_0, window_bounds = array<i64: 8, 8, 512>}, {pipeline_mode = #tpu.pipeline_mode<synchronous>, transform_indices = @transform_1, window_bounds = array<i64: 128, 512>}, {transform_indices = @transform_2, window_bounds = array<i64: 8, 8, 128>}]} {
    %c0_i32 = arith.constant 0 : i32
    %0 = arith.cmpi eq, %arg1, %c0_i32 : i32
    %1 = arith.extui %0 : i1 to i32
    %c0_i32_0 = arith.constant 0 : i32
    %2 = arith.cmpi ne, %1, %c0_i32_0 : i32
    scf.if %2 {
      %cst_122 = arith.constant 0.000000e+00 : f32
      %328 = vector.broadcast %cst_122 : f32 to vector<8x128xf32>
      %c0_123 = arith.constant 0 : index
      %c0_124 = arith.constant 0 : index
      %329 = vector.load %arg5[%c0_123, %c0_124] : memref<8x128xf32, #tpu.memory_space<vmem>>, vector<8x128xf32>
      tpu.vector_store %arg5[%c0_123, %c0_124], %328 {strides = array<i32>} : memref<8x128xf32, #tpu.memory_space<vmem>>, vector<8x128xf32>,
      %cst_125 = arith.constant 0.000000e+00 : f32
      %330 = vector.broadcast %cst_125 : f32 to vector<8x128xf32>
      %c0_126 = arith.constant 0 : index
      %c0_127 = arith.constant 0 : index
      %331 = vector.load %arg6[%c0_126, %c0_127] : memref<8x128xf32, #tpu.memory_space<vmem>>, vector<8x128xf32>
      tpu.vector_store %arg6[%c0_126, %c0_127], %330 {strides = array<i32>} : memref<8x128xf32, #tpu.memory_space<vmem>>, vector<8x128xf32>,
    } else {
    }
    %c0 = arith.constant 0 : index
    %c0_1 = arith.constant 0 : index
    %3 = vector.load %arg3[%c0, %c0_1] : memref<128x512xf32, #tpu.memory_space<vmem>>, vector<128x512xf32>
    %c0_2 = arith.constant 0 : index
    %c0_3 = arith.constant 0 : index
    %4 = vector.load %arg5[%c0_2, %c0_3] : memref<8x128xf32, #tpu.memory_space<vmem>>, vector<8x128xf32>
    %c0_4 = arith.constant 0 : index
    %c0_5 = arith.constant 0 : index
    %5 = vector.load %arg6[%c0_4, %c0_5] : memref<8x128xf32, #tpu.memory_space<vmem>>, vector<8x128xf32>
    %c0_i32_6 = arith.constant 0 : i32
    %6 = arith.index_cast %c0_i32_6 : i32 to index
    %c0_7 = arith.constant 0 : index
    %c0_8 = arith.constant 0 : index
    %7 = vector.load %arg2[%6, %c0_7, %c0_8] : memref<8x8x512xf32, #tpu.memory_space<vmem>>, vector<1x8x512xf32>
    %8 = vector.shape_cast %7 : vector<1x8x512xf32> to vector<8x512xf32>
    %cst = arith.constant dense<0.000000e+00> : vector<8x512xf32>
    %9 = tpu.matmul %4, %3, %cst {dimension_numbers = #tpu.dot_dimension_numbers<[1], [0], [0], [1], [0, 0, 1, 1], [], []>} : vector<8x128xf32>, vector<128x512xf32>, vector<8x512xf32> -> vector<8x512xf32>
    %10 = arith.addf %8, %9 : vector<8x512xf32>
    %11 = vector.extract_strided_slice %10 {offsets = [0, 0], sizes = [8, 128], strides = [1, 1]} : vector<8x512xf32> to vector<8x128xf32>
    %cst_9 = arith.constant 5.000000e-01 : f32
    %12 = vector.broadcast %cst_9 : f32 to vector<8x128xf32>
    %13 = arith.mulf %12, %11 : vector<8x128xf32>
    %14 = math.tanh %13 : vector<8x128xf32>
    %cst_10 = arith.constant 1.000000e+00 : f32
    %15 = vector.broadcast %cst_10 : f32 to vector<8x128xf32>
    %16 = arith.addf %14, %15 : vector<8x128xf32>
    %cst_11 = arith.constant 5.000000e-01 : f32
    %17 = vector.broadcast %cst_11 : f32 to vector<8x128xf32>
    %18 = arith.mulf %17, %16 : vector<8x128xf32>
    %19 = vector.extract_strided_slice %10 {offsets = [0, 128], sizes = [8, 128], strides = [1, 1]} : vector<8x512xf32> to vector<8x128xf32>
    %cst_12 = arith.constant 5.000000e-01 : f32
    %20 = vector.broadcast %cst_12 : f32 to vector<8x128xf32>
    %21 = arith.mulf %20, %19 : vector<8x128xf32>
    %22 = math.tanh %21 : vector<8x128xf32>
    %cst_13 = arith.constant 1.000000e+00 : f32
    %23 = vector.broadcast %cst_13 : f32 to vector<8x128xf32>
    %24 = arith.addf %22, %23 : vector<8x128xf32>
    %cst_14 = arith.constant 5.000000e-01 : f32
    %25 = vector.broadcast %cst_14 : f32 to vector<8x128xf32>
    %26 = arith.mulf %25, %24 : vector<8x128xf32>
    %27 = vector.extract_strided_slice %10 {offsets = [0, 256], sizes = [8, 128], strides = [1, 1]} : vector<8x512xf32> to vector<8x128xf32>
    %28 = math.tanh %27 : vector<8x128xf32>
    %29 = vector.extract_strided_slice %10 {offsets = [0, 384], sizes = [8, 128], strides = [1, 1]} : vector<8x512xf32> to vector<8x128xf32>
    %cst_15 = arith.constant 5.000000e-01 : f32
    %30 = vector.broadcast %cst_15 : f32 to vector<8x128xf32>
    %31 = arith.mulf %30, %29 : vector<8x128xf32>
    %32 = math.tanh %31 : vector<8x128xf32>
    %cst_16 = arith.constant 1.000000e+00 : f32
    %33 = vector.broadcast %cst_16 : f32 to vector<8x128xf32>
    %34 = arith.addf %32, %33 : vector<8x128xf32>
    %cst_17 = arith.constant 5.000000e-01 : f32
    %35 = vector.broadcast %cst_17 : f32 to vector<8x128xf32>
    %36 = arith.mulf %35, %34 : vector<8x128xf32>
    %37 = arith.mulf %26, %5 : vector<8x128xf32>
    %38 = arith.mulf %18, %28 : vector<8x128xf32>
    %39 = arith.addf %37, %38 : vector<8x128xf32>
    %40 = math.tanh %39 : vector<8x128xf32>
    %41 = arith.mulf %36, %40 : vector<8x128xf32>
    %42 = arith.index_cast %c0_i32_6 : i32 to index
    %c0_18 = arith.constant 0 : index
    %c0_19 = arith.constant 0 : index
    %43 = vector.load %arg4[%42, %c0_18, %c0_19] : memref<8x8x128xf32, #tpu.memory_space<vmem>>, vector<1x8x128xf32>
    %44 = vector.shape_cast %43 : vector<1x8x128xf32> to vector<8x128xf32>
    %45 = vector.shape_cast %41 : vector<8x128xf32> to vector<1x8x128xf32>
    tpu.vector_store %arg4[%42, %c0_18, %c0_19], %45 {strides = array<i32>} : memref<8x8x128xf32, #tpu.memory_space<vmem>>, vector<1x8x128xf32>,
    %c1_i32 = arith.constant 1 : i32
    %46 = arith.index_cast %c1_i32 : i32 to index
    %c0_20 = arith.constant 0 : index
    %c0_21 = arith.constant 0 : index
    %47 = vector.load %arg2[%46, %c0_20, %c0_21] : memref<8x8x512xf32, #tpu.memory_space<vmem>>, vector<1x8x512xf32>
    %48 = vector.shape_cast %47 : vector<1x8x512xf32> to vector<8x512xf32>
    %cst_22 = arith.constant dense<0.000000e+00> : vector<8x512xf32>
    %49 = tpu.matmul %41, %3, %cst_22 {dimension_numbers = #tpu.dot_dimension_numbers<[1], [0], [0], [1], [0, 0, 1, 1], [], []>} : vector<8x128xf32>, vector<128x512xf32>, vector<8x512xf32> -> vector<8x512xf32>
    %50 = arith.addf %48, %49 : vector<8x512xf32>
    %51 = vector.extract_strided_slice %50 {offsets = [0, 0], sizes = [8, 128], strides = [1, 1]} : vector<8x512xf32> to vector<8x128xf32>
    %cst_23 = arith.constant 5.000000e-01 : f32
    %52 = vector.broadcast %cst_23 : f32 to vector<8x128xf32>
    %53 = arith.mulf %52, %51 : vector<8x128xf32>
    %54 = math.tanh %53 : vector<8x128xf32>
    %cst_24 = arith.constant 1.000000e+00 : f32
    %55 = vector.broadcast %cst_24 : f32 to vector<8x128xf32>
    %56 = arith.addf %54, %55 : vector<8x128xf32>
    %cst_25 = arith.constant 5.000000e-01 : f32
    %57 = vector.broadcast %cst_25 : f32 to vector<8x128xf32>
    %58 = arith.mulf %57, %56 : vector<8x128xf32>
    %59 = vector.extract_strided_slice %50 {offsets = [0, 128], sizes = [8, 128], strides = [1, 1]} : vector<8x512xf32> to vector<8x128xf32>
    %cst_26 = arith.constant 5.000000e-01 : f32
    %60 = vector.broadcast %cst_26 : f32 to vector<8x128xf32>
    %61 = arith.mulf %60, %59 : vector<8x128xf32>
    %62 = math.tanh %61 : vector<8x128xf32>
    %cst_27 = arith.constant 1.000000e+00 : f32
    %63 = vector.broadcast %cst_27 : f32 to vector<8x128xf32>
    %64 = arith.addf %62, %63 : vector<8x128xf32>
    %cst_28 = arith.constant 5.000000e-01 : f32
    %65 = vector.broadcast %cst_28 : f32 to vector<8x128xf32>
    %66 = arith.mulf %65, %64 : vector<8x128xf32>
    %67 = vector.extract_strided_slice %50 {offsets = [0, 256], sizes = [8, 128], strides = [1, 1]} : vector<8x512xf32> to vector<8x128xf32>
    %68 = math.tanh %67 : vector<8x128xf32>
    %69 = vector.extract_strided_slice %50 {offsets = [0, 384], sizes = [8, 128], strides = [1, 1]} : vector<8x512xf32> to vector<8x128xf32>
    %cst_29 = arith.constant 5.000000e-01 : f32
    %70 = vector.broadcast %cst_29 : f32 to vector<8x128xf32>
    %71 = arith.mulf %70, %69 : vector<8x128xf32>
    %72 = math.tanh %71 : vector<8x128xf32>
    %cst_30 = arith.constant 1.000000e+00 : f32
    %73 = vector.broadcast %cst_30 : f32 to vector<8x128xf32>
    %74 = arith.addf %72, %73 : vector<8x128xf32>
    %cst_31 = arith.constant 5.000000e-01 : f32
    %75 = vector.broadcast %cst_31 : f32 to vector<8x128xf32>
    %76 = arith.mulf %75, %74 : vector<8x128xf32>
    %77 = arith.mulf %66, %39 : vector<8x128xf32>
    %78 = arith.mulf %58, %68 : vector<8x128xf32>
    %79 = arith.addf %77, %78 : vector<8x128xf32>
    %80 = math.tanh %79 : vector<8x128xf32>
    %81 = arith.mulf %76, %80 : vector<8x128xf32>
    %82 = arith.index_cast %c1_i32 : i32 to index
    %c0_32 = arith.constant 0 : index
    %c0_33 = arith.constant 0 : index
    %83 = vector.load %arg4[%82, %c0_32, %c0_33] : memref<8x8x128xf32, #tpu.memory_space<vmem>>, vector<1x8x128xf32>
    %84 = vector.shape_cast %83 : vector<1x8x128xf32> to vector<8x128xf32>
    %85 = vector.shape_cast %81 : vector<8x128xf32> to vector<1x8x128xf32>
    tpu.vector_store %arg4[%82, %c0_32, %c0_33], %85 {strides = array<i32>} : memref<8x8x128xf32, #tpu.memory_space<vmem>>, vector<1x8x128xf32>,
    %c2_i32 = arith.constant 2 : i32
    %86 = arith.index_cast %c2_i32 : i32 to index
    %c0_34 = arith.constant 0 : index
    %c0_35 = arith.constant 0 : index
    %87 = vector.load %arg2[%86, %c0_34, %c0_35] : memref<8x8x512xf32, #tpu.memory_space<vmem>>, vector<1x8x512xf32>
    %88 = vector.shape_cast %87 : vector<1x8x512xf32> to vector<8x512xf32>
    %cst_36 = arith.constant dense<0.000000e+00> : vector<8x512xf32>
    %89 = tpu.matmul %81, %3, %cst_36 {dimension_numbers = #tpu.dot_dimension_numbers<[1], [0], [0], [1], [0, 0, 1, 1], [], []>} : vector<8x128xf32>, vector<128x512xf32>, vector<8x512xf32> -> vector<8x512xf32>
    %90 = arith.addf %88, %89 : vector<8x512xf32>
    %91 = vector.extract_strided_slice %90 {offsets = [0, 0], sizes = [8, 128], strides = [1, 1]} : vector<8x512xf32> to vector<8x128xf32>
    %cst_37 = arith.constant 5.000000e-01 : f32
    %92 = vector.broadcast %cst_37 : f32 to vector<8x128xf32>
    %93 = arith.mulf %92, %91 : vector<8x128xf32>
    %94 = math.tanh %93 : vector<8x128xf32>
    %cst_38 = arith.constant 1.000000e+00 : f32
    %95 = vector.broadcast %cst_38 : f32 to vector<8x128xf32>
    %96 = arith.addf %94, %95 : vector<8x128xf32>
    %cst_39 = arith.constant 5.000000e-01 : f32
    %97 = vector.broadcast %cst_39 : f32 to vector<8x128xf32>
    %98 = arith.mulf %97, %96 : vector<8x128xf32>
    %99 = vector.extract_strided_slice %90 {offsets = [0, 128], sizes = [8, 128], strides = [1, 1]} : vector<8x512xf32> to vector<8x128xf32>
    %cst_40 = arith.constant 5.000000e-01 : f32
    %100 = vector.broadcast %cst_40 : f32 to vector<8x128xf32>
    %101 = arith.mulf %100, %99 : vector<8x128xf32>
    %102 = math.tanh %101 : vector<8x128xf32>
    %cst_41 = arith.constant 1.000000e+00 : f32
    %103 = vector.broadcast %cst_41 : f32 to vector<8x128xf32>
    %104 = arith.addf %102, %103 : vector<8x128xf32>
    %cst_42 = arith.constant 5.000000e-01 : f32
    %105 = vector.broadcast %cst_42 : f32 to vector<8x128xf32>
    %106 = arith.mulf %105, %104 : vector<8x128xf32>
    %107 = vector.extract_strided_slice %90 {offsets = [0, 256], sizes = [8, 128], strides = [1, 1]} : vector<8x512xf32> to vector<8x128xf32>
    %108 = math.tanh %107 : vector<8x128xf32>
    %109 = vector.extract_strided_slice %90 {offsets = [0, 384], sizes = [8, 128], strides = [1, 1]} : vector<8x512xf32> to vector<8x128xf32>
    %cst_43 = arith.constant 5.000000e-01 : f32
    %110 = vector.broadcast %cst_43 : f32 to vector<8x128xf32>
    %111 = arith.mulf %110, %109 : vector<8x128xf32>
    %112 = math.tanh %111 : vector<8x128xf32>
    %cst_44 = arith.constant 1.000000e+00 : f32
    %113 = vector.broadcast %cst_44 : f32 to vector<8x128xf32>
    %114 = arith.addf %112, %113 : vector<8x128xf32>
    %cst_45 = arith.constant 5.000000e-01 : f32
    %115 = vector.broadcast %cst_45 : f32 to vector<8x128xf32>
    %116 = arith.mulf %115, %114 : vector<8x128xf32>
    %117 = arith.mulf %106, %79 : vector<8x128xf32>
    %118 = arith.mulf %98, %108 : vector<8x128xf32>
    %119 = arith.addf %117, %118 : vector<8x128xf32>
    %120 = math.tanh %119 : vector<8x128xf32>
    %121 = arith.mulf %116, %120 : vector<8x128xf32>
    %122 = arith.index_cast %c2_i32 : i32 to index
    %c0_46 = arith.constant 0 : index
    %c0_47 = arith.constant 0 : index
    %123 = vector.load %arg4[%122, %c0_46, %c0_47] : memref<8x8x128xf32, #tpu.memory_space<vmem>>, vector<1x8x128xf32>
    %124 = vector.shape_cast %123 : vector<1x8x128xf32> to vector<8x128xf32>
    %125 = vector.shape_cast %121 : vector<8x128xf32> to vector<1x8x128xf32>
    tpu.vector_store %arg4[%122, %c0_46, %c0_47], %125 {strides = array<i32>} : memref<8x8x128xf32, #tpu.memory_space<vmem>>, vector<1x8x128xf32>,
    %c3_i32 = arith.constant 3 : i32
    %126 = arith.index_cast %c3_i32 : i32 to index
    %c0_48 = arith.constant 0 : index
    %c0_49 = arith.constant 0 : index
    %127 = vector.load %arg2[%126, %c0_48, %c0_49] : memref<8x8x512xf32, #tpu.memory_space<vmem>>, vector<1x8x512xf32>
    %128 = vector.shape_cast %127 : vector<1x8x512xf32> to vector<8x512xf32>
    %cst_50 = arith.constant dense<0.000000e+00> : vector<8x512xf32>
    %129 = tpu.matmul %121, %3, %cst_50 {dimension_numbers = #tpu.dot_dimension_numbers<[1], [0], [0], [1], [0, 0, 1, 1], [], []>} : vector<8x128xf32>, vector<128x512xf32>, vector<8x512xf32> -> vector<8x512xf32>
    %130 = arith.addf %128, %129 : vector<8x512xf32>
    %131 = vector.extract_strided_slice %130 {offsets = [0, 0], sizes = [8, 128], strides = [1, 1]} : vector<8x512xf32> to vector<8x128xf32>
    %cst_51 = arith.constant 5.000000e-01 : f32
    %132 = vector.broadcast %cst_51 : f32 to vector<8x128xf32>
    %133 = arith.mulf %132, %131 : vector<8x128xf32>
    %134 = math.tanh %133 : vector<8x128xf32>
    %cst_52 = arith.constant 1.000000e+00 : f32
    %135 = vector.broadcast %cst_52 : f32 to vector<8x128xf32>
    %136 = arith.addf %134, %135 : vector<8x128xf32>
    %cst_53 = arith.constant 5.000000e-01 : f32
    %137 = vector.broadcast %cst_53 : f32 to vector<8x128xf32>
    %138 = arith.mulf %137, %136 : vector<8x128xf32>
    %139 = vector.extract_strided_slice %130 {offsets = [0, 128], sizes = [8, 128], strides = [1, 1]} : vector<8x512xf32> to vector<8x128xf32>
    %cst_54 = arith.constant 5.000000e-01 : f32
    %140 = vector.broadcast %cst_54 : f32 to vector<8x128xf32>
    %141 = arith.mulf %140, %139 : vector<8x128xf32>
    %142 = math.tanh %141 : vector<8x128xf32>
    %cst_55 = arith.constant 1.000000e+00 : f32
    %143 = vector.broadcast %cst_55 : f32 to vector<8x128xf32>
    %144 = arith.addf %142, %143 : vector<8x128xf32>
    %cst_56 = arith.constant 5.000000e-01 : f32
    %145 = vector.broadcast %cst_56 : f32 to vector<8x128xf32>
    %146 = arith.mulf %145, %144 : vector<8x128xf32>
    %147 = vector.extract_strided_slice %130 {offsets = [0, 256], sizes = [8, 128], strides = [1, 1]} : vector<8x512xf32> to vector<8x128xf32>
    %148 = math.tanh %147 : vector<8x128xf32>
    %149 = vector.extract_strided_slice %130 {offsets = [0, 384], sizes = [8, 128], strides = [1, 1]} : vector<8x512xf32> to vector<8x128xf32>
    %cst_57 = arith.constant 5.000000e-01 : f32
    %150 = vector.broadcast %cst_57 : f32 to vector<8x128xf32>
    %151 = arith.mulf %150, %149 : vector<8x128xf32>
    %152 = math.tanh %151 : vector<8x128xf32>
    %cst_58 = arith.constant 1.000000e+00 : f32
    %153 = vector.broadcast %cst_58 : f32 to vector<8x128xf32>
    %154 = arith.addf %152, %153 : vector<8x128xf32>
    %cst_59 = arith.constant 5.000000e-01 : f32
    %155 = vector.broadcast %cst_59 : f32 to vector<8x128xf32>
    %156 = arith.mulf %155, %154 : vector<8x128xf32>
    %157 = arith.mulf %146, %119 : vector<8x128xf32>
    %158 = arith.mulf %138, %148 : vector<8x128xf32>
    %159 = arith.addf %157, %158 : vector<8x128xf32>
    %160 = math.tanh %159 : vector<8x128xf32>
    %161 = arith.mulf %156, %160 : vector<8x128xf32>
    %162 = arith.index_cast %c3_i32 : i32 to index
    %c0_60 = arith.constant 0 : index
    %c0_61 = arith.constant 0 : index
    %163 = vector.load %arg4[%162, %c0_60, %c0_61] : memref<8x8x128xf32, #tpu.memory_space<vmem>>, vector<1x8x128xf32>
    %164 = vector.shape_cast %163 : vector<1x8x128xf32> to vector<8x128xf32>
    %165 = vector.shape_cast %161 : vector<8x128xf32> to vector<1x8x128xf32>
    tpu.vector_store %arg4[%162, %c0_60, %c0_61], %165 {strides = array<i32>} : memref<8x8x128xf32, #tpu.memory_space<vmem>>, vector<1x8x128xf32>,
    %c4_i32 = arith.constant 4 : i32
    %166 = arith.index_cast %c4_i32 : i32 to index
    %c0_62 = arith.constant 0 : index
    %c0_63 = arith.constant 0 : index
    %167 = vector.load %arg2[%166, %c0_62, %c0_63] : memref<8x8x512xf32, #tpu.memory_space<vmem>>, vector<1x8x512xf32>
    %168 = vector.shape_cast %167 : vector<1x8x512xf32> to vector<8x512xf32>
    %cst_64 = arith.constant dense<0.000000e+00> : vector<8x512xf32>
    %169 = tpu.matmul %161, %3, %cst_64 {dimension_numbers = #tpu.dot_dimension_numbers<[1], [0], [0], [1], [0, 0, 1, 1], [], []>} : vector<8x128xf32>, vector<128x512xf32>, vector<8x512xf32> -> vector<8x512xf32>
    %170 = arith.addf %168, %169 : vector<8x512xf32>
    %171 = vector.extract_strided_slice %170 {offsets = [0, 0], sizes = [8, 128], strides = [1, 1]} : vector<8x512xf32> to vector<8x128xf32>
    %cst_65 = arith.constant 5.000000e-01 : f32
    %172 = vector.broadcast %cst_65 : f32 to vector<8x128xf32>
    %173 = arith.mulf %172, %171 : vector<8x128xf32>
    %174 = math.tanh %173 : vector<8x128xf32>
    %cst_66 = arith.constant 1.000000e+00 : f32
    %175 = vector.broadcast %cst_66 : f32 to vector<8x128xf32>
    %176 = arith.addf %174, %175 : vector<8x128xf32>
    %cst_67 = arith.constant 5.000000e-01 : f32
    %177 = vector.broadcast %cst_67 : f32 to vector<8x128xf32>
    %178 = arith.mulf %177, %176 : vector<8x128xf32>
    %179 = vector.extract_strided_slice %170 {offsets = [0, 128], sizes = [8, 128], strides = [1, 1]} : vector<8x512xf32> to vector<8x128xf32>
    %cst_68 = arith.constant 5.000000e-01 : f32
    %180 = vector.broadcast %cst_68 : f32 to vector<8x128xf32>
    %181 = arith.mulf %180, %179 : vector<8x128xf32>
    %182 = math.tanh %181 : vector<8x128xf32>
    %cst_69 = arith.constant 1.000000e+00 : f32
    %183 = vector.broadcast %cst_69 : f32 to vector<8x128xf32>
    %184 = arith.addf %182, %183 : vector<8x128xf32>
    %cst_70 = arith.constant 5.000000e-01 : f32
    %185 = vector.broadcast %cst_70 : f32 to vector<8x128xf32>
    %186 = arith.mulf %185, %184 : vector<8x128xf32>
    %187 = vector.extract_strided_slice %170 {offsets = [0, 256], sizes = [8, 128], strides = [1, 1]} : vector<8x512xf32> to vector<8x128xf32>
    %188 = math.tanh %187 : vector<8x128xf32>
    %189 = vector.extract_strided_slice %170 {offsets = [0, 384], sizes = [8, 128], strides = [1, 1]} : vector<8x512xf32> to vector<8x128xf32>
    %cst_71 = arith.constant 5.000000e-01 : f32
    %190 = vector.broadcast %cst_71 : f32 to vector<8x128xf32>
    %191 = arith.mulf %190, %189 : vector<8x128xf32>
    %192 = math.tanh %191 : vector<8x128xf32>
    %cst_72 = arith.constant 1.000000e+00 : f32
    %193 = vector.broadcast %cst_72 : f32 to vector<8x128xf32>
    %194 = arith.addf %192, %193 : vector<8x128xf32>
    %cst_73 = arith.constant 5.000000e-01 : f32
    %195 = vector.broadcast %cst_73 : f32 to vector<8x128xf32>
    %196 = arith.mulf %195, %194 : vector<8x128xf32>
    %197 = arith.mulf %186, %159 : vector<8x128xf32>
    %198 = arith.mulf %178, %188 : vector<8x128xf32>
    %199 = arith.addf %197, %198 : vector<8x128xf32>
    %200 = math.tanh %199 : vector<8x128xf32>
    %201 = arith.mulf %196, %200 : vector<8x128xf32>
    %202 = arith.index_cast %c4_i32 : i32 to index
    %c0_74 = arith.constant 0 : index
    %c0_75 = arith.constant 0 : index
    %203 = vector.load %arg4[%202, %c0_74, %c0_75] : memref<8x8x128xf32, #tpu.memory_space<vmem>>, vector<1x8x128xf32>
    %204 = vector.shape_cast %203 : vector<1x8x128xf32> to vector<8x128xf32>
    %205 = vector.shape_cast %201 : vector<8x128xf32> to vector<1x8x128xf32>
    tpu.vector_store %arg4[%202, %c0_74, %c0_75], %205 {strides = array<i32>} : memref<8x8x128xf32, #tpu.memory_space<vmem>>, vector<1x8x128xf32>,
    %c5_i32 = arith.constant 5 : i32
    %206 = arith.index_cast %c5_i32 : i32 to index
    %c0_76 = arith.constant 0 : index
    %c0_77 = arith.constant 0 : index
    %207 = vector.load %arg2[%206, %c0_76, %c0_77] : memref<8x8x512xf32, #tpu.memory_space<vmem>>, vector<1x8x512xf32>
    %208 = vector.shape_cast %207 : vector<1x8x512xf32> to vector<8x512xf32>
    %cst_78 = arith.constant dense<0.000000e+00> : vector<8x512xf32>
    %209 = tpu.matmul %201, %3, %cst_78 {dimension_numbers = #tpu.dot_dimension_numbers<[1], [0], [0], [1], [0, 0, 1, 1], [], []>} : vector<8x128xf32>, vector<128x512xf32>, vector<8x512xf32> -> vector<8x512xf32>
    %210 = arith.addf %208, %209 : vector<8x512xf32>
    %211 = vector.extract_strided_slice %210 {offsets = [0, 0], sizes = [8, 128], strides = [1, 1]} : vector<8x512xf32> to vector<8x128xf32>
    %cst_79 = arith.constant 5.000000e-01 : f32
    %212 = vector.broadcast %cst_79 : f32 to vector<8x128xf32>
    %213 = arith.mulf %212, %211 : vector<8x128xf32>
    %214 = math.tanh %213 : vector<8x128xf32>
    %cst_80 = arith.constant 1.000000e+00 : f32
    %215 = vector.broadcast %cst_80 : f32 to vector<8x128xf32>
    %216 = arith.addf %214, %215 : vector<8x128xf32>
    %cst_81 = arith.constant 5.000000e-01 : f32
    %217 = vector.broadcast %cst_81 : f32 to vector<8x128xf32>
    %218 = arith.mulf %217, %216 : vector<8x128xf32>
    %219 = vector.extract_strided_slice %210 {offsets = [0, 128], sizes = [8, 128], strides = [1, 1]} : vector<8x512xf32> to vector<8x128xf32>
    %cst_82 = arith.constant 5.000000e-01 : f32
    %220 = vector.broadcast %cst_82 : f32 to vector<8x128xf32>
    %221 = arith.mulf %220, %219 : vector<8x128xf32>
    %222 = math.tanh %221 : vector<8x128xf32>
    %cst_83 = arith.constant 1.000000e+00 : f32
    %223 = vector.broadcast %cst_83 : f32 to vector<8x128xf32>
    %224 = arith.addf %222, %223 : vector<8x128xf32>
    %cst_84 = arith.constant 5.000000e-01 : f32
    %225 = vector.broadcast %cst_84 : f32 to vector<8x128xf32>
    %226 = arith.mulf %225, %224 : vector<8x128xf32>
    %227 = vector.extract_strided_slice %210 {offsets = [0, 256], sizes = [8, 128], strides = [1, 1]} : vector<8x512xf32> to vector<8x128xf32>
    %228 = math.tanh %227 : vector<8x128xf32>
    %229 = vector.extract_strided_slice %210 {offsets = [0, 384], sizes = [8, 128], strides = [1, 1]} : vector<8x512xf32> to vector<8x128xf32>
    %cst_85 = arith.constant 5.000000e-01 : f32
    %230 = vector.broadcast %cst_85 : f32 to vector<8x128xf32>
    %231 = arith.mulf %230, %229 : vector<8x128xf32>
    %232 = math.tanh %231 : vector<8x128xf32>
    %cst_86 = arith.constant 1.000000e+00 : f32
    %233 = vector.broadcast %cst_86 : f32 to vector<8x128xf32>
    %234 = arith.addf %232, %233 : vector<8x128xf32>
    %cst_87 = arith.constant 5.000000e-01 : f32
    %235 = vector.broadcast %cst_87 : f32 to vector<8x128xf32>
    %236 = arith.mulf %235, %234 : vector<8x128xf32>
    %237 = arith.mulf %226, %199 : vector<8x128xf32>
    %238 = arith.mulf %218, %228 : vector<8x128xf32>
    %239 = arith.addf %237, %238 : vector<8x128xf32>
    %240 = math.tanh %239 : vector<8x128xf32>
    %241 = arith.mulf %236, %240 : vector<8x128xf32>
    %242 = arith.index_cast %c5_i32 : i32 to index
    %c0_88 = arith.constant 0 : index
    %c0_89 = arith.constant 0 : index
    %243 = vector.load %arg4[%242, %c0_88, %c0_89] : memref<8x8x128xf32, #tpu.memory_space<vmem>>, vector<1x8x128xf32>
    %244 = vector.shape_cast %243 : vector<1x8x128xf32> to vector<8x128xf32>
    %245 = vector.shape_cast %241 : vector<8x128xf32> to vector<1x8x128xf32>
    tpu.vector_store %arg4[%242, %c0_88, %c0_89], %245 {strides = array<i32>} : memref<8x8x128xf32, #tpu.memory_space<vmem>>, vector<1x8x128xf32>,
    %c6_i32 = arith.constant 6 : i32
    %246 = arith.index_cast %c6_i32 : i32 to index
    %c0_90 = arith.constant 0 : index
    %c0_91 = arith.constant 0 : index
    %247 = vector.load %arg2[%246, %c0_90, %c0_91] : memref<8x8x512xf32, #tpu.memory_space<vmem>>, vector<1x8x512xf32>
    %248 = vector.shape_cast %247 : vector<1x8x512xf32> to vector<8x512xf32>
    %cst_92 = arith.constant dense<0.000000e+00> : vector<8x512xf32>
    %249 = tpu.matmul %241, %3, %cst_92 {dimension_numbers = #tpu.dot_dimension_numbers<[1], [0], [0], [1], [0, 0, 1, 1], [], []>} : vector<8x128xf32>, vector<128x512xf32>, vector<8x512xf32> -> vector<8x512xf32>
    %250 = arith.addf %248, %249 : vector<8x512xf32>
    %251 = vector.extract_strided_slice %250 {offsets = [0, 0], sizes = [8, 128], strides = [1, 1]} : vector<8x512xf32> to vector<8x128xf32>
    %cst_93 = arith.constant 5.000000e-01 : f32
    %252 = vector.broadcast %cst_93 : f32 to vector<8x128xf32>
    %253 = arith.mulf %252, %251 : vector<8x128xf32>
    %254 = math.tanh %253 : vector<8x128xf32>
    %cst_94 = arith.constant 1.000000e+00 : f32
    %255 = vector.broadcast %cst_94 : f32 to vector<8x128xf32>
    %256 = arith.addf %254, %255 : vector<8x128xf32>
    %cst_95 = arith.constant 5.000000e-01 : f32
    %257 = vector.broadcast %cst_95 : f32 to vector<8x128xf32>
    %258 = arith.mulf %257, %256 : vector<8x128xf32>
    %259 = vector.extract_strided_slice %250 {offsets = [0, 128], sizes = [8, 128], strides = [1, 1]} : vector<8x512xf32> to vector<8x128xf32>
    %cst_96 = arith.constant 5.000000e-01 : f32
    %260 = vector.broadcast %cst_96 : f32 to vector<8x128xf32>
    %261 = arith.mulf %260, %259 : vector<8x128xf32>
    %262 = math.tanh %261 : vector<8x128xf32>
    %cst_97 = arith.constant 1.000000e+00 : f32
    %263 = vector.broadcast %cst_97 : f32 to vector<8x128xf32>
    %264 = arith.addf %262, %263 : vector<8x128xf32>
    %cst_98 = arith.constant 5.000000e-01 : f32
    %265 = vector.broadcast %cst_98 : f32 to vector<8x128xf32>
    %266 = arith.mulf %265, %264 : vector<8x128xf32>
    %267 = vector.extract_strided_slice %250 {offsets = [0, 256], sizes = [8, 128], strides = [1, 1]} : vector<8x512xf32> to vector<8x128xf32>
    %268 = math.tanh %267 : vector<8x128xf32>
    %269 = vector.extract_strided_slice %250 {offsets = [0, 384], sizes = [8, 128], strides = [1, 1]} : vector<8x512xf32> to vector<8x128xf32>
    %cst_99 = arith.constant 5.000000e-01 : f32
    %270 = vector.broadcast %cst_99 : f32 to vector<8x128xf32>
    %271 = arith.mulf %270, %269 : vector<8x128xf32>
    %272 = math.tanh %271 : vector<8x128xf32>
    %cst_100 = arith.constant 1.000000e+00 : f32
    %273 = vector.broadcast %cst_100 : f32 to vector<8x128xf32>
    %274 = arith.addf %272, %273 : vector<8x128xf32>
    %cst_101 = arith.constant 5.000000e-01 : f32
    %275 = vector.broadcast %cst_101 : f32 to vector<8x128xf32>
    %276 = arith.mulf %275, %274 : vector<8x128xf32>
    %277 = arith.mulf %266, %239 : vector<8x128xf32>
    %278 = arith.mulf %258, %268 : vector<8x128xf32>
    %279 = arith.addf %277, %278 : vector<8x128xf32>
    %280 = math.tanh %279 : vector<8x128xf32>
    %281 = arith.mulf %276, %280 : vector<8x128xf32>
    %282 = arith.index_cast %c6_i32 : i32 to index
    %c0_102 = arith.constant 0 : index
    %c0_103 = arith.constant 0 : index
    %283 = vector.load %arg4[%282, %c0_102, %c0_103] : memref<8x8x128xf32, #tpu.memory_space<vmem>>, vector<1x8x128xf32>
    %284 = vector.shape_cast %283 : vector<1x8x128xf32> to vector<8x128xf32>
    %285 = vector.shape_cast %281 : vector<8x128xf32> to vector<1x8x128xf32>
    tpu.vector_store %arg4[%282, %c0_102, %c0_103], %285 {strides = array<i32>} : memref<8x8x128xf32, #tpu.memory_space<vmem>>, vector<1x8x128xf32>,
    %c7_i32 = arith.constant 7 : i32
    %286 = arith.index_cast %c7_i32 : i32 to index
    %c0_104 = arith.constant 0 : index
    %c0_105 = arith.constant 0 : index
    %287 = vector.load %arg2[%286, %c0_104, %c0_105] : memref<8x8x512xf32, #tpu.memory_space<vmem>>, vector<1x8x512xf32>
    %288 = vector.shape_cast %287 : vector<1x8x512xf32> to vector<8x512xf32>
    %cst_106 = arith.constant dense<0.000000e+00> : vector<8x512xf32>
    %289 = tpu.matmul %281, %3, %cst_106 {dimension_numbers = #tpu.dot_dimension_numbers<[1], [0], [0], [1], [0, 0, 1, 1], [], []>} : vector<8x128xf32>, vector<128x512xf32>, vector<8x512xf32> -> vector<8x512xf32>
    %290 = arith.addf %288, %289 : vector<8x512xf32>
    %291 = vector.extract_strided_slice %290 {offsets = [0, 0], sizes = [8, 128], strides = [1, 1]} : vector<8x512xf32> to vector<8x128xf32>
    %cst_107 = arith.constant 5.000000e-01 : f32
    %292 = vector.broadcast %cst_107 : f32 to vector<8x128xf32>
    %293 = arith.mulf %292, %291 : vector<8x128xf32>
    %294 = math.tanh %293 : vector<8x128xf32>
    %cst_108 = arith.constant 1.000000e+00 : f32
    %295 = vector.broadcast %cst_108 : f32 to vector<8x128xf32>
    %296 = arith.addf %294, %295 : vector<8x128xf32>
    %cst_109 = arith.constant 5.000000e-01 : f32
    %297 = vector.broadcast %cst_109 : f32 to vector<8x128xf32>
    %298 = arith.mulf %297, %296 : vector<8x128xf32>
    %299 = vector.extract_strided_slice %290 {offsets = [0, 128], sizes = [8, 128], strides = [1, 1]} : vector<8x512xf32> to vector<8x128xf32>
    %cst_110 = arith.constant 5.000000e-01 : f32
    %300 = vector.broadcast %cst_110 : f32 to vector<8x128xf32>
    %301 = arith.mulf %300, %299 : vector<8x128xf32>
    %302 = math.tanh %301 : vector<8x128xf32>
    %cst_111 = arith.constant 1.000000e+00 : f32
    %303 = vector.broadcast %cst_111 : f32 to vector<8x128xf32>
    %304 = arith.addf %302, %303 : vector<8x128xf32>
    %cst_112 = arith.constant 5.000000e-01 : f32
    %305 = vector.broadcast %cst_112 : f32 to vector<8x128xf32>
    %306 = arith.mulf %305, %304 : vector<8x128xf32>
    %307 = vector.extract_strided_slice %290 {offsets = [0, 256], sizes = [8, 128], strides = [1, 1]} : vector<8x512xf32> to vector<8x128xf32>
    %308 = math.tanh %307 : vector<8x128xf32>
    %309 = vector.extract_strided_slice %290 {offsets = [0, 384], sizes = [8, 128], strides = [1, 1]} : vector<8x512xf32> to vector<8x128xf32>
    %cst_113 = arith.constant 5.000000e-01 : f32
    %310 = vector.broadcast %cst_113 : f32 to vector<8x128xf32>
    %311 = arith.mulf %310, %309 : vector<8x128xf32>
    %312 = math.tanh %311 : vector<8x128xf32>
    %cst_114 = arith.constant 1.000000e+00 : f32
    %313 = vector.broadcast %cst_114 : f32 to vector<8x128xf32>
    %314 = arith.addf %312, %313 : vector<8x128xf32>
    %cst_115 = arith.constant 5.000000e-01 : f32
    %315 = vector.broadcast %cst_115 : f32 to vector<8x128xf32>
    %316 = arith.mulf %315, %314 : vector<8x128xf32>
    %317 = arith.mulf %306, %279 : vector<8x128xf32>
    %318 = arith.mulf %298, %308 : vector<8x128xf32>
    %319 = arith.addf %317, %318 : vector<8x128xf32>
    %320 = math.tanh %319 : vector<8x128xf32>
    %321 = arith.mulf %316, %320 : vector<8x128xf32>
    %322 = arith.index_cast %c7_i32 : i32 to index
    %c0_116 = arith.constant 0 : index
    %c0_117 = arith.constant 0 : index
    %323 = vector.load %arg4[%322, %c0_116, %c0_117] : memref<8x8x128xf32, #tpu.memory_space<vmem>>, vector<1x8x128xf32>
    %324 = vector.shape_cast %323 : vector<1x8x128xf32> to vector<8x128xf32>
    %325 = vector.shape_cast %321 : vector<8x128xf32> to vector<1x8x128xf32>
    tpu.vector_store %arg4[%322, %c0_116, %c0_117], %325 {strides = array<i32>} : memref<8x8x128xf32, #tpu.memory_space<vmem>>, vector<1x8x128xf32>,
    %c8_i32 = arith.constant 8 : i32
    %c0_118 = arith.constant 0 : index
    %c0_119 = arith.constant 0 : index
    %326 = vector.load %arg5[%c0_118, %c0_119] : memref<8x128xf32, #tpu.memory_space<vmem>>, vector<8x128xf32>
    tpu.vector_store %arg5[%c0_118, %c0_119], %321 {strides = array<i32>} : memref<8x128xf32, #tpu.memory_space<vmem>>, vector<8x128xf32>,
    %c0_120 = arith.constant 0 : index
    %c0_121 = arith.constant 0 : index
    %327 = vector.load %arg6[%c0_120, %c0_121] : memref<8x128xf32, #tpu.memory_space<vmem>>, vector<8x128xf32>
    tpu.vector_store %arg6[%c0_120, %c0_121], %319 {strides = array<i32>} : memref<8x128xf32, #tpu.memory_space<vmem>>, vector<8x128xf32>,
    return
  }
  func.func @transform_0(%arg0: i32, %arg1: i32) -> (i32, i32, i32) {
    %c0_i32 = arith.constant 0 : i32
    %c0_i32_0 = arith.constant 0 : i32
    return %arg1, %arg0, %c0_i32 : i32, i32, i32
  }
  func.func @transform_1(%arg0: i32, %arg1: i32) -> (i32, i32) {
    %c0_i32 = arith.constant 0 : i32
    %c0_i32_0 = arith.constant 0 : i32
    %c0_i32_1 = arith.constant 0 : i32
    return %c0_i32, %c0_i32_0 : i32, i32
  }
  func.func @transform_2(%arg0: i32, %arg1: i32) -> (i32, i32, i32) {
    %c0_i32 = arith.constant 0 : i32
    %c0_i32_0 = arith.constant 0 : i32
    return %arg1, %arg0, %c0_i32 : i32, i32, i32
  }
}

</mosaic_0001>

<bundles_post_ra>
// kernel: tpu_custom_call.1
= control target key start
LH: loop header
LB: loop body
LE: loop exit
PB: predicated region body
PF: predicated region fallthrough
CT: control target
= control target key end

     0   :  { %7 = vsyncpa [#allocation5], 0  ;;  %s2591_s0 = inlined_call_operand.hbm [shape: f32[8,8,512], index: 0, kind: input, shape index: {}]   ;;  %s2592_s1 = inlined_call_operand.hbm [shape: f32[128,512], index: 1, kind: input, shape index: {}]   ;;  %s2593_s2 = inlined_call_operand.hbm [shape: f32[8,8,128], index: 2, kind: output, shape index: {}]  }
   0x1   :  { %8 = vsyncpa [#allocation8], 0 }
   0x2   :  { %9 = vsyncpa [#allocation6], 0  ;;  %s2170_s9 = smov [#allocation4]   ;;  %s2098_s13 = scalar_lea.hbm %s2591_s0, 4096 }
   0x3   :  { %s15_s10 = sshll.u32 %s2170_s9, 4  ;;  %p2099_p0 = scmp.ne.s32.totalorder %s2591_s0, %s2098_s13  ;;  %s16_s10 = int_to_ptr.vmem [resolvable:$true] %s15_s10 }
   0x4   :  { %p2102_p1 = scmp.lt.u32.totalorder %s2098_s13, %s2591_s0 }
   0x6   :  { %p2104_p2 = pnand %p2102_p1, %p2099_p0 }
   0x8   :  { %2107 = shalt.err (!%p2104_p2)
}
   0x9   :  { %s2108_s18 = scalar_lea.vmem %s16_s10, 4096  ;;  %p2113_p4 = scmp.lt.s32.totalorder %s16_s10, %s16_s10 }
   0xa   :  { %p2109_p3 = scmp.ne.s32.totalorder %s16_s10, %s2108_s18  ;;  %p2114_p5 = scmp.lt.s32.totalorder %s2108_s18, %s2108_s18 }
   0xc   :  { %p2115_p6 = por %p2114_p5, %p2113_p4 }
   0xe   :  { %p2116_p7 = pnand %p2115_p6, %p2109_p3 }
  0x10   :  { %2119 = shalt.err (!%p2116_p7)
}
  0x11   :  { %s2171_s19 = smov 512   ;;  %s2172_s20 = smov 32  }
  0x12   :  { %21 = dma.hbm_to_vmem [thread:$0]  %s2591_s0, 4096, %s16_s10, [#allocation5], %s2171_s19, %s2171_s19, %s2172_s20  }
  0x13   :  { %s2173_s23 = smov [#allocation7]   ;;  %s2120_s27 = scalar_lea.hbm %s2592_s1, 8192 }
  0x14   :  { %s27_s24 = sshll.u32 %s2173_s23, 4  ;;  %p2121_p8 = scmp.ne.s32.totalorder %s2592_s1, %s2120_s27  ;;  %s28_s24 = int_to_ptr.vmem [resolvable:$true] %s27_s24 }
  0x15   :  { %p2124_p9 = scmp.lt.u32.totalorder %s2120_s27, %s2592_s1 }
  0x17   :  { %p2126_p10 = pnand %p2124_p9, %p2121_p8 }
  0x19   :  { %2129 = shalt.err (!%p2126_p10)
}
  0x1a   :  { %s2130_s4 = scalar_lea.vmem %s28_s24, 8192  ;;  %p2135_p12 = scmp.lt.s32.totalorder %s28_s24, %s28_s24 }
  0x1b   :  { %p2131_p11 = scmp.ne.s32.totalorder %s28_s24, %s2130_s4  ;;  %p2136_p13 = scmp.lt.s32.totalorder %s2130_s4, %s2130_s4 }
  0x1d   :  { %p2137_p0 = por %p2136_p13, %p2135_p12 }
  0x1f   :  { %p2138_p1 = pnand %p2137_p0, %p2131_p11 }
  0x21   :  { %2141 = shalt.err (!%p2138_p1)
}
  0x22   :  { %33 = dma.hbm_to_vmem [thread:$0]  %s2592_s1, 8192, %s28_s24, [#allocation8], %s2171_s19, %s2171_s19, %s2172_s20  }
  0x23   :  { %2164 = dma.done.wait [#allocation5], 4096  }
  0x24   :  { %2165 = vsyncadd [#allocation5], 4294963200 }
  0x25   :  { %2166 = dma.done.wait [#allocation8], 8192  }
  0x26   :  { %2167 = vsyncadd [#allocation8], 4294959104  ;;  %v2174_v0 = vmov 0.0   ;;  %v47_v1 = vld [vmem:[#allocation7 + $0x8] sm:$0xff]  ;;  %v46_v3 = vld [vmem:[#allocation7] sm:$0xff]  ;;  %s2175_s1 = smov [#allocation9]  }
  0x27   :  { %180 = vmatprep.mubr.f32.mxu0 %v2174_v0  ;;  %251 = vmatprep.mubr.f32.mxu1 %v2174_v0  ;;  %v51_v2 = vld [vmem:[#allocation7 + $0x28] sm:$0xff]  ;;  %v50_v5 = vld [vmem:[#allocation7 + $0x20] sm:$0xff]  ;;  %v49_v12 = vld [vmem:[#allocation7 + $0x18] sm:$0xff]  ;;  %s1485_s6 = sshll.u32 %s2175_s1, 4  ;;  %s1486_s6 = int_to_ptr.vmem [resolvable:$true] %s1485_s6 }
  0x28   :  { %v2219_v4 = vpack.c.bf16 %v51_v2, %v47_v1  ;;  %v55_v6 = vld [vmem:[#allocation7 + $0x48] sm:$0xff]  ;;  %v2221_v8 = vpack.c.bf16 %v50_v5, %v46_v3  ;;  %v54_v10 = vld [vmem:[#allocation7 + $0x40] sm:$0xff]  ;;  %v53_v13 = vld [vmem:[#allocation7 + $0x38] sm:$0xff]  ;;  %s2142_s7 = scalar_lea.vmem %s1486_s6, 1024  ;;  %p2147_p3 = scmp.lt.s32.totalorder %s1486_s6, %s1486_s6 }
  0x29   :  { %v59_v7 = vld [vmem:[#allocation7 + $0x68] sm:$0xff]  ;;  %v58_v11 = vld [vmem:[#allocation7 + $0x60] sm:$0xff]  ;;  %v48_v14 = vld [vmem:[#allocation7 + $0x10] sm:$0xff]  ;;  %v2229_v17 = vpack.c.bf16 %v53_v13, %v49_v12  ;;  %p2143_p2 = scmp.ne.s32.totalorder %s1486_s6, %s2142_s7  ;;  %p2148_p4 = scmp.lt.s32.totalorder %s2142_s7, %s2142_s7 }
  0x2a   :  { %v2223_v9 = vpack.c.bf16 %v59_v7, %v55_v6  ;;  %1499 = vmatprep.subr.bf16.mxu0 %v2219_v4  ;;  %v52_v15 = vld [vmem:[#allocation7 + $0x30] sm:$0xff]  ;;  %v2227_v16 = vpack.c.bf16 %v58_v11, %v54_v10  ;;  %v63_v19 = vld [vmem:[#allocation7 + $0x88] sm:$0xff]  ;;  %v62_v21 = vld [vmem:[#allocation7 + $0x80] sm:$0xff] }
  0x2b   :  { %1501 = vmatpush1.bf16.msra.mxu0 %v2221_v8  ;;  %v2231_v18 = vpack.c.bf16 %v52_v15, %v48_v14  ;;  %v67_v20 = vld [vmem:[#allocation7 + $0xa8] sm:$0xff]  ;;  %v66_v23 = vld [vmem:[#allocation7 + $0xa0] sm:$0xff]  ;;  %v57_v24 = vld [vmem:[#allocation7 + $0x58] sm:$0xff]  ;;  %1531 = vmatprep.subr.bf16.mxu1 %v2229_v17  ;;  %p2149_p5 = por %p2148_p4, %p2147_p3 }
  0x2c   :  { %1503 = vmatprep.subr.bf16.mxu0 %v2223_v9  ;;  %v2234_v22 = vpack.c.bf16 %v67_v20, %v63_v19  ;;  %v61_v25 = vld [vmem:[#allocation7 + $0x78] sm:$0xff]  ;;  %v56_v27 = vld [vmem:[#allocation7 + $0x50] sm:$0xff]  ;;  %v71_v29 = vld [vmem:[#allocation7 + $0xc8] sm:$0xff]  ;;  %v2243_v32 = vpack.c.bf16 %v66_v23, %v62_v21 }
  0x2d   :  { %v2237_v26 = vpack.c.bf16 %v61_v25, %v57_v24  ;;  %v60_v28 = vld [vmem:[#allocation7 + $0x70] sm:$0xff]  ;;  %1533 = vmatpush1.bf16.msra.mxu1 %v2231_v18  ;;  %v75_v31 = vld [vmem:[#allocation7 + $0xe8] sm:$0xff]  ;;  %v65_v33 = vld [vmem:[#allocation7 + $0x98] sm:$0xff]  ;;  %p2150_p6 = pnand %p2149_p5, %p2143_p2 }
  0x2e   :  { %v2240_v30 = vpack.c.bf16 %v60_v28, %v56_v27  ;;  %v69_v34 = vld [vmem:[#allocation7 + $0xb8] sm:$0xff]  ;;  %v64_v35 = vld [vmem:[#allocation7 + $0x90] sm:$0xff]  ;;  %v2247_v36 = vpack.c.bf16 %v75_v31, %v71_v29  ;;  %v70_v37 = vld [vmem:[#allocation7 + $0xc0] sm:$0xff] }
  0x2f   :  { %1505 = vmatpush1.bf16.msra.mxu0 %v2227_v16  ;;  %1535 = vmatprep.subr.bf16.mxu1 %v2237_v26  ;;  %v74_v38 = vld [vmem:[#allocation7 + $0xe0] sm:$0xff]  ;;  %v2249_v39 = vpack.c.bf16 %v69_v34, %v65_v33  ;;  %v68_v40 = vld [vmem:[#allocation7 + $0xb0] sm:$0xff]  ;;  %v79_v41 = vld [vmem:[#allocation7 + $0x108] sm:$0xff] }
  0x30   :  { %1507 = vmatprep.subr.bf16.mxu0 %v2234_v22  ;;  %v83_v42 = vld [vmem:[#allocation7 + $0x128] sm:$0xff]  ;;  %v73_v43 = vld [vmem:[#allocation7 + $0xd8] sm:$0xff]  ;;  %v2252_v44 = vpack.c.bf16 %v68_v40, %v64_v35  ;;  %v2255_v46 = vpack.c.bf16 %v74_v38, %v70_v37  ;;  %v78_v47 = vld [vmem:[#allocation7 + $0x100] sm:$0xff] }
  0x31   :  { %1537 = vmatpush1.bf16.msra.mxu1 %v2240_v30  ;;  %v77_v45 = vld [vmem:[#allocation7 + $0xf8] sm:$0xff]  ;;  %v72_v49 = vld [vmem:[#allocation7 + $0xd0] sm:$0xff]  ;;  %v2261_v51 = vpack.c.bf16 %v83_v42, %v79_v41  ;;  %v82_v52 = vld [vmem:[#allocation7 + $0x120] sm:$0xff] }
  0x32   :  { %1539 = vmatprep.subr.bf16.mxu1 %v2249_v39  ;;  %v2258_v48 = vpack.c.bf16 %v77_v45, %v73_v43  ;;  %v76_v50 = vld [vmem:[#allocation7 + $0xf0] sm:$0xff]  ;;  %v81_v53 = vld [vmem:[#allocation7 + $0x118] sm:$0xff]  ;;  %v87_v55 = vld [vmem:[#allocation7 + $0x148] sm:$0xff]  ;;  %v2267_v58 = vpack.c.bf16 %v82_v52, %v78_v47 }
  0x33   :  { %1509 = vmatpush1.bf16.msra.mxu0 %v2243_v32  ;;  %v85_v54 = vld [vmem:[#allocation7 + $0x138] sm:$0xff]  ;;  %v91_v56 = vld [vmem:[#allocation7 + $0x168] sm:$0xff]  ;;  %v2264_v57 = vpack.c.bf16 %v76_v50, %v72_v49  ;;  %v86_v59 = vld [vmem:[#allocation7 + $0x140] sm:$0xff] }
  0x34   :  { %1511 = vmatprep.subr.bf16.mxu0 %v2247_v36  ;;  %v2270_v60 = vpack.c.bf16 %v85_v54, %v81_v53  ;;  %v80_v61 = vld [vmem:[#allocation7 + $0x110] sm:$0xff]  ;;  %v2273_v63 = vpack.c.bf16 %v91_v56, %v87_v55  ;;  %v90_v1 = vld [vmem:[#allocation7 + $0x160] sm:$0xff]  ;;  %v89_v2 = vld [vmem:[#allocation7 + $0x158] sm:$0xff] }
  0x35   :  { %1541 = vmatpush1.bf16.msra.mxu1 %v2252_v44  ;;  %v84_v62 = vld [vmem:[#allocation7 + $0x130] sm:$0xff]  ;;  %v93_v3 = vld [vmem:[#allocation7 + $0x178] sm:$0xff]  ;;  %v95_v5 = vld [vmem:[#allocation7 + $0x188] sm:$0xff]  ;;  %v2279_v10 = vpack.c.bf16 %v90_v1, %v86_v59 }
  0x36   :  { %1543 = vmatprep.subr.bf16.mxu1 %v2258_v48  ;;  %v99_v6 = vld [vmem:[#allocation7 + $0x1a8] sm:$0xff]  ;;  %v2276_v7 = vpack.c.bf16 %v84_v62, %v80_v61  ;;  %v94_v11 = vld [vmem:[#allocation7 + $0x180] sm:$0xff]  ;;  %v2282_v12 = vpack.c.bf16 %v93_v3, %v89_v2  ;;  %v88_v13 = vld [vmem:[#allocation7 + $0x150] sm:$0xff] }
  0x37   :  { %1513 = vmatpush1.bf16.msra.mxu0 %v2255_v46  ;;  %v92_v14 = vld [vmem:[#allocation7 + $0x170] sm:$0xff]  ;;  %v2285_v15 = vpack.c.bf16 %v99_v6, %v95_v5  ;;  %v98_v19 = vld [vmem:[#allocation7 + $0x1a0] sm:$0xff]  ;;  %v97_v20 = vld [vmem:[#allocation7 + $0x198] sm:$0xff] }
  0x38   :  { %1515 = vmatprep.subr.bf16.mxu0 %v2261_v51  ;;  %v101_v21 = vld [vmem:[#allocation7 + $0x1b8] sm:$0xff]  ;;  %v103_v23 = vld [vmem:[#allocation7 + $0x1c8] sm:$0xff]  ;;  %v2288_v25 = vpack.c.bf16 %v92_v14, %v88_v13  ;;  %v2291_v27 = vpack.c.bf16 %v98_v19, %v94_v11  ;;  %v102_v28 = vld [vmem:[#allocation7 + $0x1c0] sm:$0xff] }
  0x39   :  { %1545 = vmatpush1.bf16.msra.mxu1 %v2264_v57  ;;  %v107_v24 = vld [vmem:[#allocation7 + $0x1e8] sm:$0xff]  ;;  %v2294_v29 = vpack.c.bf16 %v101_v21, %v97_v20  ;;  %v96_v31 = vld [vmem:[#allocation7 + $0x190] sm:$0xff]  ;;  %v106_v35 = vld [vmem:[#allocation7 + $0x1e0] sm:$0xff] }
  0x3a   :  { %1547 = vmatprep.subr.bf16.mxu1 %v2270_v60  ;;  %v100_v33 = vld [vmem:[#allocation7 + $0x1b0] sm:$0xff]  ;;  %v2297_v34 = vpack.c.bf16 %v107_v24, %v103_v23  ;;  %v105_v37 = vld [vmem:[#allocation7 + $0x1d8] sm:$0xff]  ;;  %v2303_v41 = vpack.c.bf16 %v106_v35, %v102_v28  ;;  %v112_v49 = vld [vmem:[#allocation4] sm:$0xff] }
  0x3b   :  { %1517 = vmatpush1.bf16.msra.mxu0 %v2267_v58  ;;  %v109_v38 = vld [vmem:[#allocation7 + $0x1f8] sm:$0xff]  ;;  %v2300_v40 = vpack.c.bf16 %v100_v33, %v96_v31  ;;  %v104_v43 = vld [vmem:[#allocation7 + $0x1d0] sm:$0xff]  ;;  %v113_v50 = vld [vmem:[#allocation4 + $0x8] sm:$0xff] }
  0x3c   :  { %1519 = vmatprep.subr.bf16.mxu0 %v2273_v63  ;;  %v2306_v42 = vpack.c.bf16 %v109_v38, %v105_v37  ;;  %v108_v45 = vld [vmem:[#allocation7 + $0x1f0] sm:$0xff]  ;;  %v115_v3 = vld [vmem:[#allocation4 + $0x18] sm:$0xff] }
  0x3d   :  { %1549 = vmatpush1.bf16.msra.mxu1 %v2276_v7  ;;  %v2310_v47 = vpack.c.bf16 %v108_v45, %v104_v43  ;;  %v114_v55 = vld [vmem:[#allocation4 + $0x10] sm:$0xff]  ;;  %v282_v45 = vld [vmem:[#allocation4 + $0x20] sm:$0xff] }
  0x3e   :  { %1551 = vmatprep.subr.bf16.mxu1 %v2282_v12 }
  0x3f   :  { %1521 = vmatpush1.bf16.msra.mxu0 %v2279_v10 }
  0x40   :  { %1523 = vmatprep.subr.bf16.mxu0 %v2285_v15 }
  0x41   :  { %1553 = vmatpush1.bf16.msra.mxu1 %v2288_v25 }
  0x42   :  { %1555 = vmatprep.subr.bf16.mxu1 %v2294_v29 }
  0x43   :  { %1525 = vmatpush1.bf16.msra.mxu0 %v2291_v27 }
  0x44   :  { %1527 = vmatprep.subr.bf16.mxu0 %v2297_v34 }
  0x45   :  { %1557 = vmatpush1.bf16.msra.mxu1 %v2300_v40 }
  0x46   :  { %1559 = vmatprep.subr.bf16.mxu1 %v2306_v42 }
  0x47   :  { %1529 = vmatpush1.bf16.msra.mxu0 %v2303_v41 }
  0x48   :  { %1563 = vmatprep.subr.bf16.mxu0 %v2219_v4 }
  0x49   :  { %1561 = vmatpush1.bf16.msra.mxu1 %v2310_v47 }
  0x4a   :  { %181 = vmatmul.mubr.f32.vlgmr.msra.gmra.mrb[0].mxu0 %v2174_v0  ;;  %1595 = vmatprep.subr.bf16.mxu1 %v2229_v17 }
  0x4b   :  { %1565 = vmatpush1.bf16.msra.mxu0 %v2221_v8  ;;  %350 = vmatprep.mubr.f32.mxu0 %v2174_v0 }
  0x4c   :  { %1567 = vmatprep.subr.bf16.mxu0 %v2223_v9  ;;  %252 = vmatmul.mubr.f32.vlgmr.msra.gmra.mrb[0].mxu1 %v2174_v0 }
  0x4d   :  { %1597 = vmatpush1.bf16.msra.mxu1 %v2231_v18  ;;  %421 = vmatprep.mubr.f32.mxu1 %v2174_v0 }
  0x4e   :  { %1599 = vmatprep.subr.bf16.mxu1 %v2237_v26 }
  0x4f   :  { %1569 = vmatpush1.bf16.msra.mxu0 %v2227_v16 }
  0x50   :  { %1571 = vmatprep.subr.bf16.mxu0 %v2234_v22 }
  0x51   :  { %1601 = vmatpush1.bf16.msra.mxu1 %v2240_v30 }
  0x52   :  { %1603 = vmatprep.subr.bf16.mxu1 %v2249_v39 }
  0x53   :  { %1573 = vmatpush1.bf16.msra.mxu0 %v2243_v32 }
  0x54   :  { %1575 = vmatprep.subr.bf16.mxu0 %v2247_v36 }
  0x55   :  { %1605 = vmatpush1.bf16.msra.mxu1 %v2252_v44 }
  0x56   :  { %1607 = vmatprep.subr.bf16.mxu1 %v2258_v48 }
  0x57   :  { %1577 = vmatpush1.bf16.msra.mxu0 %v2255_v46 }
  0x58   :  { %1579 = vmatprep.subr.bf16.mxu0 %v2261_v51 }
  0x59   :  { %1609 = vmatpush1.bf16.msra.mxu1 %v2264_v57 }
  0x5a   :  { %1611 = vmatprep.subr.bf16.mxu1 %v2270_v60 }
  0x5b   :  { %1581 = vmatpush1.bf16.msra.mxu0 %v2267_v58 }
  0x5c   :  { %1583 = vmatprep.subr.bf16.mxu0 %v2273_v63 }
  0x5d   :  { %1613 = vmatpush1.bf16.msra.mxu1 %v2276_v7 }
  0x5e   :  { %1615 = vmatprep.subr.bf16.mxu1 %v2282_v12 }
  0x5f   :  { %1585 = vmatpush1.bf16.msra.mxu0 %v2279_v10 }
  0x60   :  { %1587 = vmatprep.subr.bf16.mxu0 %v2285_v15 }
  0x61   :  { %1617 = vmatpush1.bf16.msra.mxu1 %v2288_v25 }
  0x62   :  { %1619 = vmatprep.subr.bf16.mxu1 %v2294_v29 }
  0x63   :  { %1589 = vmatpush1.bf16.msra.mxu0 %v2291_v27 }
  0x64   :  { %1591 = vmatprep.subr.bf16.mxu0 %v2297_v34 }
  0x65   :  { %1621 = vmatpush1.bf16.msra.mxu1 %v2300_v40 }
  0x66   :  { %1623 = vmatprep.subr.bf16.mxu1 %v2306_v42 }
  0x67   :  { %1593 = vmatpush1.bf16.msra.mxu0 %v2303_v41 }
  0x68   :  { %1627 = vmatprep.subr.bf16.mxu0 %v2219_v4 }
  0x69   :  { %1625 = vmatpush1.bf16.msra.mxu1 %v2310_v47 }
  0x6a   :  { %1659 = vmatprep.subr.bf16.mxu1 %v2229_v17 }
 0x11d   :  { %v182_v52 = vpop.f32.mrb[0].mxu0 }
 0x11e   :  { %v258_v53 = vadd.f32 %v182_v52, %v112_v49  ;;  %v184_v54 = vpop.f32.mrb[1].mxu0  ;;  %v283_v49 = vld [vmem:[#allocation4 + $0x28] sm:$0xff] }
 0x11f   :  { %v259_v56 = vadd.f32 %v184_v54, %v113_v50  ;;  %v253_v61 = vpop.f32.mrb[0].mxu1 }
 0x120   :  { %v262_v59 = vmul.f32 0.5, %v258_v53  ;;  %v260_v1 = vadd.f32 %v253_v61, %v114_v55  ;;  %v255_v2 = vpop.f32.mrb[1].mxu1 }
 0x121   :  { %v266_v62 = vmul.f32 0.5, %v259_v56  ;;  %v261_v5 = vadd.f32 %v255_v2, %v115_v3  ;;  %v284_v56 = vld [vmem:[#allocation4 + $0x30] sm:$0xff]  ;;  %v285_v2 = vld [vmem:[#allocation4 + $0x38] sm:$0xff] }
 0x122   :  { %2018 = vtanh.f32 %v262_v59 }
 0x123   :  { %2020 = vtanh.f32 %v266_v62  ;;  %v271_v6 = vmul.f32 0.5, %v261_v5 }
 0x124   :  { %2022 = vtanh.f32 %v260_v1 }
 0x125   :  { %2024 = vtanh.f32 %v271_v6 }
 0x12c   :  { %v2019_v11 = vpop.eup %2018 }
 0x12d   :  { %v2021_v13 = vpop.eup %2020  ;;  %v264_v14 = vadd.f32 1.0, %v2019_v11 }
 0x12e   :  { %v2023_v19 = vpop.eup %2022  ;;  %v268_v20 = vadd.f32 1.0, %v2021_v13 }
 0x12f   :  { %v265_v21 = vmul.f32 0.5, %v264_v14  ;;  %v2025_v33 = vpop.eup %2024 }
 0x130   :  { %v269_v23 = vmul.f32 0.5, %v268_v20  ;;  %v273_v35 = vadd.f32 1.0, %v2025_v33 }
 0x131   :  { %v276_v24 = vmul.f32 %v2023_v19, %v265_v21 }
 0x132   :  { %v275_v28 = vmul.f32 0.0, %v269_v23  ;;  %v274_v37 = vmul.f32 0.5, %v273_v35 }
 0x134   :  { %v2353_v31 = vadd.f32 %v276_v24, %v275_v28 }
 0x136   :  { %2026 = vtanh.f32 %v2353_v31 }
 0x140   :  { %v2027_v38 = vpop.eup %2026 }
 0x141   :  { %v279_v43 = vmul.f32 %v2027_v38, %v274_v37 }
 0x143   :  { %280 = vst [vmem:[#allocation9] sm:$0xff] %v279_v43  ;;  %351 = vmatmul.mubr.f32.vlgmr.msra.gmra.mrb[2].mxu0 %v279_v43  ;;  %422 = vmatmul.mubr.f32.vlgmr.msra.gmra.mrb[2].mxu1 %v279_v43 }
 0x144   :  { %1629 = vmatpush1.bf16.msra.mxu0 %v2221_v8  ;;  %1661 = vmatpush1.bf16.msra.mxu1 %v2231_v18 }
 0x145   :  { %1631 = vmatprep.subr.bf16.mxu0 %v2223_v9  ;;  %1663 = vmatprep.subr.bf16.mxu1 %v2237_v26 }
 0x146   :  { %521 = vmatprep.mubr.f32.mxu0 %v2174_v0  ;;  %592 = vmatprep.mubr.f32.mxu1 %v2174_v0 }
 0x148   :  { %1633 = vmatpush1.bf16.msra.mxu0 %v2227_v16  ;;  %1665 = vmatpush1.bf16.msra.mxu1 %v2240_v30 }
 0x149   :  { %1635 = vmatprep.subr.bf16.mxu0 %v2234_v22  ;;  %1667 = vmatprep.subr.bf16.mxu1 %v2249_v39 }
 0x14c   :  { %1637 = vmatpush1.bf16.msra.mxu0 %v2243_v32  ;;  %1669 = vmatpush1.bf16.msra.mxu1 %v2252_v44 }
 0x14d   :  { %1639 = vmatprep.subr.bf16.mxu0 %v2247_v36  ;;  %1671 = vmatprep.subr.bf16.mxu1 %v2258_v48 }
 0x150   :  { %1641 = vmatpush1.bf16.msra.mxu0 %v2255_v46  ;;  %1673 = vmatpush1.bf16.msra.mxu1 %v2264_v57 }
 0x151   :  { %1643 = vmatprep.subr.bf16.mxu0 %v2261_v51  ;;  %1675 = vmatprep.subr.bf16.mxu1 %v2270_v60 }
 0x154   :  { %1645 = vmatpush1.bf16.msra.mxu0 %v2267_v58  ;;  %1677 = vmatpush1.bf16.msra.mxu1 %v2276_v7 }
 0x155   :  { %1647 = vmatprep.subr.bf16.mxu0 %v2273_v63  ;;  %1679 = vmatprep.subr.bf16.mxu1 %v2282_v12 }
 0x158   :  { %1649 = vmatpush1.bf16.msra.mxu0 %v2279_v10  ;;  %1681 = vmatpush1.bf16.msra.mxu1 %v2288_v25 }
 0x159   :  { %1651 = vmatprep.subr.bf16.mxu0 %v2285_v15  ;;  %1683 = vmatprep.subr.bf16.mxu1 %v2294_v29 }
 0x15c   :  { %1653 = vmatpush1.bf16.msra.mxu0 %v2291_v27  ;;  %1685 = vmatpush1.bf16.msra.mxu1 %v2300_v40 }
 0x15d   :  { %1655 = vmatprep.subr.bf16.mxu0 %v2297_v34  ;;  %1687 = vmatprep.subr.bf16.mxu1 %v2306_v42 }
 0x160   :  { %1657 = vmatpush1.bf16.msra.mxu0 %v2303_v41  ;;  %1689 = vmatpush1.bf16.msra.mxu1 %v2310_v47 }
 0x161   :  { %1691 = vmatprep.subr.bf16.mxu0 %v2219_v4  ;;  %1723 = vmatprep.subr.bf16.mxu1 %v2229_v17 }
 0x216   :  { %v352_v50 = vpop.f32.mrb[2].mxu0  ;;  %v423_v52 = vpop.f32.mrb[2].mxu1 }
 0x217   :  { %v428_v53 = vadd.f32 %v352_v50, %v282_v45  ;;  %v354_v54 = vpop.f32.mrb[3].mxu0  ;;  %v425_v55 = vpop.f32.mrb[3].mxu1  ;;  %v430_v1 = vadd.f32 %v423_v52, %v284_v56  ;;  %v454_v45 = vld [vmem:[#allocation4 + $0x48] sm:$0xff] }
 0x218   :  { %v429_v59 = vadd.f32 %v354_v54, %v283_v49  ;;  %v431_v3 = vadd.f32 %v425_v55, %v285_v2  ;;  %v455_v55 = vld [vmem:[#allocation4 + $0x50] sm:$0xff] }
 0x219   :  { %v432_v61 = vmul.f32 0.5, %v428_v53 }
 0x21a   :  { %v436_v62 = vmul.f32 0.5, %v429_v59  ;;  %v441_v5 = vmul.f32 0.5, %v431_v3 }
 0x21b   :  { %2028 = vtanh.f32 %v432_v61 }
 0x21c   :  { %2030 = vtanh.f32 %v436_v62 }
 0x21d   :  { %2032 = vtanh.f32 %v430_v1  ;;  %v456_v1 = vld [vmem:[#allocation4 + $0x58] sm:$0xff] }
 0x21e   :  { %2034 = vtanh.f32 %v441_v5 }
 0x225   :  { %v2029_v6 = vpop.eup %2028 }
 0x226   :  { %v2031_v11 = vpop.eup %2030  ;;  %v434_v13 = vadd.f32 1.0, %v2029_v6 }
 0x227   :  { %v438_v14 = vadd.f32 1.0, %v2031_v11  ;;  %v2033_v20 = vpop.eup %2032 }
 0x228   :  { %v435_v19 = vmul.f32 0.5, %v434_v13  ;;  %v2035_v33 = vpop.eup %2034 }
 0x229   :  { %v439_v21 = vmul.f32 0.5, %v438_v14  ;;  %v443_v35 = vadd.f32 1.0, %v2035_v33 }
 0x22a   :  { %v446_v23 = vmul.f32 %v2033_v20, %v435_v19 }
 0x22b   :  { %v445_v24 = vmul.f32 %v439_v21, %v2353_v31  ;;  %v444_v37 = vmul.f32 0.5, %v443_v35  ;;  %v453_v31 = vld [vmem:[#allocation4 + $0x40] sm:$0xff] }
 0x22d   :  { %v2391_v28 = vadd.f32 %v446_v23, %v445_v24 }
 0x22f   :  { %2036 = vtanh.f32 %v2391_v28 }
 0x239   :  { %v2037_v38 = vpop.eup %2036 }
 0x23a   :  { %v449_v43 = vmul.f32 %v2037_v38, %v444_v37 }
 0x23c   :  { %451 = vst [vmem:[#allocation9 + $0x8] sm:$0xff] %v449_v43  ;;  %522 = vmatmul.mubr.f32.vlgmr.msra.gmra.mrb[4].mxu0 %v449_v43  ;;  %593 = vmatmul.mubr.f32.vlgmr.msra.gmra.mrb[4].mxu1 %v449_v43 }
 0x23d   :  { %1693 = vmatpush1.bf16.msra.mxu0 %v2221_v8  ;;  %1725 = vmatpush1.bf16.msra.mxu1 %v2231_v18 }
 0x23e   :  { %1695 = vmatprep.subr.bf16.mxu0 %v2223_v9  ;;  %1727 = vmatprep.subr.bf16.mxu1 %v2237_v26 }
 0x23f   :  { %692 = vmatprep.mubr.f32.mxu0 %v2174_v0  ;;  %763 = vmatprep.mubr.f32.mxu1 %v2174_v0 }
 0x241   :  { %1697 = vmatpush1.bf16.msra.mxu0 %v2227_v16  ;;  %1729 = vmatpush1.bf16.msra.mxu1 %v2240_v30 }
 0x242   :  { %1699 = vmatprep.subr.bf16.mxu0 %v2234_v22  ;;  %1731 = vmatprep.subr.bf16.mxu1 %v2249_v39 }
 0x245   :  { %1701 = vmatpush1.bf16.msra.mxu0 %v2243_v32  ;;  %1733 = vmatpush1.bf16.msra.mxu1 %v2252_v44 }
 0x246   :  { %1703 = vmatprep.subr.bf16.mxu0 %v2247_v36  ;;  %1735 = vmatprep.subr.bf16.mxu1 %v2258_v48 }
 0x249   :  { %1705 = vmatpush1.bf16.msra.mxu0 %v2255_v46  ;;  %1737 = vmatpush1.bf16.msra.mxu1 %v2264_v57 }
 0x24a   :  { %1707 = vmatprep.subr.bf16.mxu0 %v2261_v51  ;;  %1739 = vmatprep.subr.bf16.mxu1 %v2270_v60 }
 0x24d   :  { %1709 = vmatpush1.bf16.msra.mxu0 %v2267_v58  ;;  %1741 = vmatpush1.bf16.msra.mxu1 %v2276_v7 }
 0x24e   :  { %1711 = vmatprep.subr.bf16.mxu0 %v2273_v63  ;;  %1743 = vmatprep.subr.bf16.mxu1 %v2282_v12 }
 0x251   :  { %1713 = vmatpush1.bf16.msra.mxu0 %v2279_v10  ;;  %1745 = vmatpush1.bf16.msra.mxu1 %v2288_v25 }
 0x252   :  { %1715 = vmatprep.subr.bf16.mxu0 %v2285_v15  ;;  %1747 = vmatprep.subr.bf16.mxu1 %v2294_v29 }
 0x255   :  { %1717 = vmatpush1.bf16.msra.mxu0 %v2291_v27  ;;  %1749 = vmatpush1.bf16.msra.mxu1 %v2300_v40 }
 0x256   :  { %1719 = vmatprep.subr.bf16.mxu0 %v2297_v34  ;;  %1751 = vmatprep.subr.bf16.mxu1 %v2306_v42 }
 0x259   :  { %1721 = vmatpush1.bf16.msra.mxu0 %v2303_v41  ;;  %1753 = vmatpush1.bf16.msra.mxu1 %v2310_v47 }
 0x25a   :  { %1755 = vmatprep.subr.bf16.mxu0 %v2219_v4  ;;  %1787 = vmatprep.subr.bf16.mxu1 %v2229_v17 }
 0x30f   :  { %v523_v49 = vpop.f32.mrb[4].mxu0  ;;  %v594_v50 = vpop.f32.mrb[4].mxu1 }
 0x310   :  { %v599_v52 = vadd.f32 %v523_v49, %v453_v31  ;;  %v525_v53 = vpop.f32.mrb[5].mxu0  ;;  %v596_v54 = vpop.f32.mrb[5].mxu1  ;;  %v601_v62 = vadd.f32 %v594_v50, %v455_v55  ;;  %v625_v31 = vld [vmem:[#allocation4 + $0x68] sm:$0xff] }
 0x311   :  { %v600_v56 = vadd.f32 %v525_v53, %v454_v45  ;;  %v602_v2 = vadd.f32 %v596_v54, %v456_v1  ;;  %v626_v54 = vld [vmem:[#allocation4 + $0x70] sm:$0xff] }
 0x312   :  { %v603_v59 = vmul.f32 0.5, %v599_v52 }
 0x313   :  { %v607_v61 = vmul.f32 0.5, %v600_v56  ;;  %v612_v3 = vmul.f32 0.5, %v602_v2 }
 0x314   :  { %2038 = vtanh.f32 %v603_v59 }
 0x315   :  { %2040 = vtanh.f32 %v607_v61 }
 0x316   :  { %2042 = vtanh.f32 %v601_v62  ;;  %v627_v62 = vld [vmem:[#allocation4 + $0x78] sm:$0xff] }
 0x317   :  { %2044 = vtanh.f32 %v612_v3 }
 0x31e   :  { %v2039_v5 = vpop.eup %2038 }
 0x31f   :  { %v2041_v6 = vpop.eup %2040  ;;  %v605_v11 = vadd.f32 1.0, %v2039_v5 }
 0x320   :  { %v609_v13 = vadd.f32 1.0, %v2041_v6  ;;  %v2043_v19 = vpop.eup %2042 }
 0x321   :  { %v606_v14 = vmul.f32 0.5, %v605_v11  ;;  %v2045_v33 = vpop.eup %2044 }
 0x322   :  { %v610_v20 = vmul.f32 0.5, %v609_v13  ;;  %v614_v35 = vadd.f32 1.0, %v2045_v33 }
 0x323   :  { %v617_v21 = vmul.f32 %v2043_v19, %v606_v14 }
 0x324   :  { %v616_v23 = vmul.f32 %v610_v20, %v2391_v28  ;;  %v615_v37 = vmul.f32 0.5, %v614_v35  ;;  %v624_v28 = vld [vmem:[#allocation4 + $0x60] sm:$0xff] }
 0x326   :  { %v2429_v24 = vadd.f32 %v617_v21, %v616_v23 }
 0x328   :  { %2046 = vtanh.f32 %v2429_v24 }
 0x332   :  { %v2047_v38 = vpop.eup %2046 }
 0x333   :  { %v620_v43 = vmul.f32 %v2047_v38, %v615_v37 }
 0x335   :  { %622 = vst [vmem:[#allocation9 + $0x10] sm:$0xff] %v620_v43  ;;  %693 = vmatmul.mubr.f32.vlgmr.msra.gmra.mrb[6].mxu0 %v620_v43  ;;  %764 = vmatmul.mubr.f32.vlgmr.msra.gmra.mrb[6].mxu1 %v620_v43 }
 0x336   :  { %1757 = vmatpush1.bf16.msra.mxu0 %v2221_v8  ;;  %1789 = vmatpush1.bf16.msra.mxu1 %v2231_v18 }
 0x337   :  { %1759 = vmatprep.subr.bf16.mxu0 %v2223_v9  ;;  %1791 = vmatprep.subr.bf16.mxu1 %v2237_v26 }
 0x338   :  { %863 = vmatprep.mubr.f32.mxu0 %v2174_v0  ;;  %934 = vmatprep.mubr.f32.mxu1 %v2174_v0 }
 0x33a   :  { %1761 = vmatpush1.bf16.msra.mxu0 %v2227_v16  ;;  %1793 = vmatpush1.bf16.msra.mxu1 %v2240_v30 }
 0x33b   :  { %1763 = vmatprep.subr.bf16.mxu0 %v2234_v22  ;;  %1795 = vmatprep.subr.bf16.mxu1 %v2249_v39 }
 0x33e   :  { %1765 = vmatpush1.bf16.msra.mxu0 %v2243_v32  ;;  %1797 = vmatpush1.bf16.msra.mxu1 %v2252_v44 }
 0x33f   :  { %1767 = vmatprep.subr.bf16.mxu0 %v2247_v36  ;;  %1799 = vmatprep.subr.bf16.mxu1 %v2258_v48 }
 0x342   :  { %1769 = vmatpush1.bf16.msra.mxu0 %v2255_v46  ;;  %1801 = vmatpush1.bf16.msra.mxu1 %v2264_v57 }
 0x343   :  { %1771 = vmatprep.subr.bf16.mxu0 %v2261_v51  ;;  %1803 = vmatprep.subr.bf16.mxu1 %v2270_v60 }
 0x346   :  { %1773 = vmatpush1.bf16.msra.mxu0 %v2267_v58  ;;  %1805 = vmatpush1.bf16.msra.mxu1 %v2276_v7 }
 0x347   :  { %1775 = vmatprep.subr.bf16.mxu0 %v2273_v63  ;;  %1807 = vmatprep.subr.bf16.mxu1 %v2282_v12 }
 0x34a   :  { %1777 = vmatpush1.bf16.msra.mxu0 %v2279_v10  ;;  %1809 = vmatpush1.bf16.msra.mxu1 %v2288_v25 }
 0x34b   :  { %1779 = vmatprep.subr.bf16.mxu0 %v2285_v15  ;;  %1811 = vmatprep.subr.bf16.mxu1 %v2294_v29 }
 0x34e   :  { %1781 = vmatpush1.bf16.msra.mxu0 %v2291_v27  ;;  %1813 = vmatpush1.bf16.msra.mxu1 %v2300_v40 }
 0x34f   :  { %1783 = vmatprep.subr.bf16.mxu0 %v2297_v34  ;;  %1815 = vmatprep.subr.bf16.mxu1 %v2306_v42 }
 0x352   :  { %1785 = vmatpush1.bf16.msra.mxu0 %v2303_v41  ;;  %1817 = vmatpush1.bf16.msra.mxu1 %v2310_v47 }
 0x353   :  { %1819 = vmatprep.subr.bf16.mxu0 %v2219_v4  ;;  %1851 = vmatprep.subr.bf16.mxu1 %v2229_v17 }
 0x408   :  { %v694_v45 = vpop.f32.mrb[6].mxu0  ;;  %v765_v49 = vpop.f32.mrb[6].mxu1 }
 0x409   :  { %v770_v50 = vadd.f32 %v694_v45, %v624_v28  ;;  %v696_v52 = vpop.f32.mrb[7].mxu0  ;;  %v767_v53 = vpop.f32.mrb[7].mxu1  ;;  %v772_v61 = vadd.f32 %v765_v49, %v626_v54  ;;  %v796_v28 = vld [vmem:[#allocation4 + $0x88] sm:$0xff] }
 0x40a   :  { %v771_v55 = vadd.f32 %v696_v52, %v625_v31  ;;  %v773_v1 = vadd.f32 %v767_v53, %v627_v62  ;;  %v797_v53 = vld [vmem:[#allocation4 + $0x90] sm:$0xff] }
 0x40b   :  { %v774_v56 = vmul.f32 0.5, %v770_v50 }
 0x40c   :  { %v778_v59 = vmul.f32 0.5, %v771_v55  ;;  %v783_v2 = vmul.f32 0.5, %v773_v1 }
 0x40d   :  { %2048 = vtanh.f32 %v774_v56 }
 0x40e   :  { %2050 = vtanh.f32 %v778_v59 }
 0x40f   :  { %2052 = vtanh.f32 %v772_v61  ;;  %v798_v61 = vld [vmem:[#allocation4 + $0x98] sm:$0xff] }
 0x410   :  { %2054 = vtanh.f32 %v783_v2 }
 0x417   :  { %v2049_v3 = vpop.eup %2048 }
 0x418   :  { %v2051_v5 = vpop.eup %2050  ;;  %v776_v6 = vadd.f32 1.0, %v2049_v3 }
 0x419   :  { %v780_v11 = vadd.f32 1.0, %v2051_v5  ;;  %v2053_v14 = vpop.eup %2052 }
 0x41a   :  { %v777_v13 = vmul.f32 0.5, %v776_v6  ;;  %v2055_v33 = vpop.eup %2054 }
 0x41b   :  { %v781_v19 = vmul.f32 0.5, %v780_v11  ;;  %v785_v35 = vadd.f32 1.0, %v2055_v33 }
 0x41c   :  { %v788_v20 = vmul.f32 %v2053_v14, %v777_v13 }
 0x41d   :  { %v787_v21 = vmul.f32 %v781_v19, %v2429_v24  ;;  %v786_v37 = vmul.f32 0.5, %v785_v35  ;;  %v795_v24 = vld [vmem:[#allocation4 + $0x80] sm:$0xff] }
 0x41f   :  { %v2467_v23 = vadd.f32 %v788_v20, %v787_v21 }
 0x421   :  { %2056 = vtanh.f32 %v2467_v23 }
 0x42b   :  { %v2057_v38 = vpop.eup %2056 }
 0x42c   :  { %v791_v43 = vmul.f32 %v2057_v38, %v786_v37 }
 0x42e   :  { %793 = vst [vmem:[#allocation9 + $0x18] sm:$0xff] %v791_v43  ;;  %864 = vmatmul.mubr.f32.vlgmr.msra.gmra.mrb[8].mxu0 %v791_v43  ;;  %935 = vmatmul.mubr.f32.vlgmr.msra.gmra.mrb[8].mxu1 %v791_v43 }
 0x42f   :  { %1821 = vmatpush1.bf16.msra.mxu0 %v2221_v8  ;;  %1853 = vmatpush1.bf16.msra.mxu1 %v2231_v18 }
 0x430   :  { %1823 = vmatprep.subr.bf16.mxu0 %v2223_v9  ;;  %1855 = vmatprep.subr.bf16.mxu1 %v2237_v26 }
 0x431   :  { %1034 = vmatprep.mubr.f32.mxu0 %v2174_v0  ;;  %1105 = vmatprep.mubr.f32.mxu1 %v2174_v0 }
 0x433   :  { %1825 = vmatpush1.bf16.msra.mxu0 %v2227_v16  ;;  %1857 = vmatpush1.bf16.msra.mxu1 %v2240_v30 }
 0x434   :  { %1827 = vmatprep.subr.bf16.mxu0 %v2234_v22  ;;  %1859 = vmatprep.subr.bf16.mxu1 %v2249_v39 }
 0x437   :  { %1829 = vmatpush1.bf16.msra.mxu0 %v2243_v32  ;;  %1861 = vmatpush1.bf16.msra.mxu1 %v2252_v44 }
 0x438   :  { %1831 = vmatprep.subr.bf16.mxu0 %v2247_v36  ;;  %1863 = vmatprep.subr.bf16.mxu1 %v2258_v48 }
 0x43b   :  { %1833 = vmatpush1.bf16.msra.mxu0 %v2255_v46  ;;  %1865 = vmatpush1.bf16.msra.mxu1 %v2264_v57 }
 0x43c   :  { %1835 = vmatprep.subr.bf16.mxu0 %v2261_v51  ;;  %1867 = vmatprep.subr.bf16.mxu1 %v2270_v60 }
 0x43f   :  { %1837 = vmatpush1.bf16.msra.mxu0 %v2267_v58  ;;  %1869 = vmatpush1.bf16.msra.mxu1 %v2276_v7 }
 0x440   :  { %1839 = vmatprep.subr.bf16.mxu0 %v2273_v63  ;;  %1871 = vmatprep.subr.bf16.mxu1 %v2282_v12 }
 0x443   :  { %1841 = vmatpush1.bf16.msra.mxu0 %v2279_v10  ;;  %1873 = vmatpush1.bf16.msra.mxu1 %v2288_v25 }
 0x444   :  { %1843 = vmatprep.subr.bf16.mxu0 %v2285_v15  ;;  %1875 = vmatprep.subr.bf16.mxu1 %v2294_v29 }
 0x447   :  { %1845 = vmatpush1.bf16.msra.mxu0 %v2291_v27  ;;  %1877 = vmatpush1.bf16.msra.mxu1 %v2300_v40 }
 0x448   :  { %1847 = vmatprep.subr.bf16.mxu0 %v2297_v34  ;;  %1879 = vmatprep.subr.bf16.mxu1 %v2306_v42 }
 0x44b   :  { %1849 = vmatpush1.bf16.msra.mxu0 %v2303_v41  ;;  %1881 = vmatpush1.bf16.msra.mxu1 %v2310_v47 }
 0x44c   :  { %1883 = vmatprep.subr.bf16.mxu0 %v2219_v4  ;;  %1915 = vmatprep.subr.bf16.mxu1 %v2229_v17 }
 0x501   :  { %v865_v31 = vpop.f32.mrb[8].mxu0  ;;  %v936_v45 = vpop.f32.mrb[8].mxu1 }
 0x502   :  { %v941_v49 = vadd.f32 %v865_v31, %v795_v24  ;;  %v867_v50 = vpop.f32.mrb[9].mxu0  ;;  %v938_v52 = vpop.f32.mrb[9].mxu1  ;;  %v943_v59 = vadd.f32 %v936_v45, %v797_v53  ;;  %v967_v24 = vld [vmem:[#allocation4 + $0xa8] sm:$0xff] }
 0x503   :  { %v942_v54 = vadd.f32 %v867_v50, %v796_v28  ;;  %v944_v62 = vadd.f32 %v938_v52, %v798_v61  ;;  %v968_v52 = vld [vmem:[#allocation4 + $0xb0] sm:$0xff] }
 0x504   :  { %v945_v55 = vmul.f32 0.5, %v941_v49 }
 0x505   :  { %v949_v56 = vmul.f32 0.5, %v942_v54  ;;  %v954_v1 = vmul.f32 0.5, %v944_v62 }
 0x506   :  { %2058 = vtanh.f32 %v945_v55 }
 0x507   :  { %2060 = vtanh.f32 %v949_v56 }
 0x508   :  { %2062 = vtanh.f32 %v943_v59  ;;  %v969_v59 = vld [vmem:[#allocation4 + $0xb8] sm:$0xff] }
 0x509   :  { %2064 = vtanh.f32 %v954_v1 }
 0x510   :  { %v2059_v2 = vpop.eup %2058 }
 0x511   :  { %v2061_v3 = vpop.eup %2060  ;;  %v947_v5 = vadd.f32 1.0, %v2059_v2 }
 0x512   :  { %v951_v6 = vadd.f32 1.0, %v2061_v3  ;;  %v2063_v13 = vpop.eup %2062 }
 0x513   :  { %v948_v11 = vmul.f32 0.5, %v947_v5  ;;  %v2065_v33 = vpop.eup %2064 }
 0x514   :  { %v952_v14 = vmul.f32 0.5, %v951_v6  ;;  %v956_v35 = vadd.f32 1.0, %v2065_v33 }
 0x515   :  { %v959_v19 = vmul.f32 %v2063_v13, %v948_v11 }
 0x516   :  { %v958_v20 = vmul.f32 %v952_v14, %v2467_v23  ;;  %v957_v37 = vmul.f32 0.5, %v956_v35  ;;  %v966_v23 = vld [vmem:[#allocation4 + $0xa0] sm:$0xff] }
 0x518   :  { %v2505_v21 = vadd.f32 %v959_v19, %v958_v20 }
 0x51a   :  { %2066 = vtanh.f32 %v2505_v21 }
 0x524   :  { %v2067_v38 = vpop.eup %2066 }
 0x525   :  { %v962_v43 = vmul.f32 %v2067_v38, %v957_v37 }
 0x527   :  { %964 = vst [vmem:[#allocation9 + $0x20] sm:$0xff] %v962_v43  ;;  %1035 = vmatmul.mubr.f32.vlgmr.msra.gmra.mrb[10].mxu0 %v962_v43  ;;  %1106 = vmatmul.mubr.f32.vlgmr.msra.gmra.mrb[10].mxu1 %v962_v43 }
 0x528   :  { %1885 = vmatpush1.bf16.msra.mxu0 %v2221_v8  ;;  %1917 = vmatpush1.bf16.msra.mxu1 %v2231_v18 }
 0x529   :  { %1887 = vmatprep.subr.bf16.mxu0 %v2223_v9  ;;  %1919 = vmatprep.subr.bf16.mxu1 %v2237_v26 }
 0x52a   :  { %1205 = vmatprep.mubr.f32.mxu0 %v2174_v0  ;;  %1276 = vmatprep.mubr.f32.mxu1 %v2174_v0 }
 0x52c   :  { %1889 = vmatpush1.bf16.msra.mxu0 %v2227_v16  ;;  %1921 = vmatpush1.bf16.msra.mxu1 %v2240_v30 }
 0x52d   :  { %1891 = vmatprep.subr.bf16.mxu0 %v2234_v22  ;;  %1923 = vmatprep.subr.bf16.mxu1 %v2249_v39 }
 0x530   :  { %1893 = vmatpush1.bf16.msra.mxu0 %v2243_v32  ;;  %1925 = vmatpush1.bf16.msra.mxu1 %v2252_v44 }
 0x531   :  { %1895 = vmatprep.subr.bf16.mxu0 %v2247_v36  ;;  %1927 = vmatprep.subr.bf16.mxu1 %v2258_v48 }
 0x534   :  { %1897 = vmatpush1.bf16.msra.mxu0 %v2255_v46  ;;  %1929 = vmatpush1.bf16.msra.mxu1 %v2264_v57 }
 0x535   :  { %1899 = vmatprep.subr.bf16.mxu0 %v2261_v51  ;;  %1931 = vmatprep.subr.bf16.mxu1 %v2270_v60 }
 0x538   :  { %1901 = vmatpush1.bf16.msra.mxu0 %v2267_v58  ;;  %1933 = vmatpush1.bf16.msra.mxu1 %v2276_v7 }
 0x539   :  { %1903 = vmatprep.subr.bf16.mxu0 %v2273_v63  ;;  %1935 = vmatprep.subr.bf16.mxu1 %v2282_v12 }
 0x53c   :  { %1905 = vmatpush1.bf16.msra.mxu0 %v2279_v10  ;;  %1937 = vmatpush1.bf16.msra.mxu1 %v2288_v25 }
 0x53d   :  { %1907 = vmatprep.subr.bf16.mxu0 %v2285_v15  ;;  %1939 = vmatprep.subr.bf16.mxu1 %v2294_v29 }
 0x540   :  { %1909 = vmatpush1.bf16.msra.mxu0 %v2291_v27  ;;  %1941 = vmatpush1.bf16.msra.mxu1 %v2300_v40 }
 0x541   :  { %1911 = vmatprep.subr.bf16.mxu0 %v2297_v34  ;;  %1943 = vmatprep.subr.bf16.mxu1 %v2306_v42 }
 0x544   :  { %1913 = vmatpush1.bf16.msra.mxu0 %v2303_v41  ;;  %1945 = vmatpush1.bf16.msra.mxu1 %v2310_v47 }
 0x545   :  { %1947 = vmatprep.subr.bf16.mxu0 %v2219_v4  ;;  %1979 = vmatprep.subr.bf16.mxu1 %v2229_v17 }
 0x5fa   :  { %v1036_v28 = vpop.f32.mrb[10].mxu0  ;;  %v1107_v31 = vpop.f32.mrb[10].mxu1 }
 0x5fb   :  { %v1112_v45 = vadd.f32 %v1036_v28, %v966_v23  ;;  %v1038_v49 = vpop.f32.mrb[11].mxu0  ;;  %v1109_v50 = vpop.f32.mrb[11].mxu1  ;;  %v1114_v56 = vadd.f32 %v1107_v31, %v968_v52  ;;  %v1310_v31 = vld [vmem:[#allocation4 + $0xf0] sm:$0xff] }
 0x5fc   :  { %v1113_v53 = vadd.f32 %v1038_v49, %v967_v24  ;;  %v1115_v61 = vadd.f32 %v1109_v50, %v969_v59 }
 0x5fd   :  { %v1116_v54 = vmul.f32 0.5, %v1112_v45 }
 0x5fe   :  { %v1120_v55 = vmul.f32 0.5, %v1113_v53  ;;  %v1125_v4 = vmul.f32 0.5, %v1115_v61  ;;  %v1311_v53 = vld [vmem:[#allocation4 + $0xf8] sm:$0xff] }
 0x5ff   :  { %2068 = vtanh.f32 %v1116_v54 }
 0x600   :  { %2070 = vtanh.f32 %v1120_v55 }
 0x601   :  { %2072 = vtanh.f32 %v1114_v56 }
 0x602   :  { %2074 = vtanh.f32 %v1125_v4 }
 0x609   :  { %v2069_v62 = vpop.eup %2068 }
 0x60a   :  { %v2071_v17 = vpop.eup %2070  ;;  %v1118_v1 = vadd.f32 1.0, %v2069_v62 }
 0x60b   :  { %v1122_v2 = vadd.f32 1.0, %v2071_v17  ;;  %v2073_v5 = vpop.eup %2072 }
 0x60c   :  { %v1119_v3 = vmul.f32 0.5, %v1118_v1  ;;  %v2075_v19 = vpop.eup %2074 }
 0x60d   :  { %v1123_v6 = vmul.f32 0.5, %v1122_v2  ;;  %v1127_v20 = vadd.f32 1.0, %v2075_v19 }
 0x60e   :  { %v1130_v11 = vmul.f32 %v2073_v5, %v1119_v3 }
 0x60f   :  { %v1129_v13 = vmul.f32 %v1123_v6, %v2505_v21  ;;  %v1128_v33 = vmul.f32 0.5, %v1127_v20  ;;  %v1309_v21 = vld [vmem:[#allocation4 + $0xe8] sm:$0xff] }
 0x611   :  { %v2543_v14 = vadd.f32 %v1130_v11, %v1129_v13 }
 0x613   :  { %2076 = vtanh.f32 %v2543_v14 }
 0x61d   :  { %v2077_v35 = vpop.eup %2076 }
 0x61e   :  { %v1133_v37 = vmul.f32 %v2077_v35, %v1128_v33 }
 0x620   :  { %1135 = vst [vmem:[#allocation9 + $0x28] sm:$0xff] %v1133_v37  ;;  %1206 = vmatmul.mubr.f32.vlgmr.msra.gmra.mrb[12].mxu0 %v1133_v37  ;;  %1277 = vmatmul.mubr.f32.vlgmr.msra.gmra.mrb[12].mxu1 %v1133_v37 }
 0x621   :  { %1949 = vmatpush1.bf16.msra.mxu0 %v2221_v8  ;;  %1981 = vmatpush1.bf16.msra.mxu1 %v2231_v18  ;;  %v1138_v8 = vld [vmem:[#allocation4 + $0xc8] sm:$0xff] }
 0x622   :  { %1951 = vmatprep.subr.bf16.mxu0 %v2223_v9  ;;  %1983 = vmatprep.subr.bf16.mxu1 %v2237_v26 }
 0x623   :  { %1376 = vmatprep.mubr.f32.mxu0 %v2174_v0  ;;  %1447 = vmatprep.mubr.f32.mxu1 %v2174_v0  ;;  %v1137_v0 = vld [vmem:[#allocation4 + $0xc0] sm:$0xff] }
 0x625   :  { %1953 = vmatpush1.bf16.msra.mxu0 %v2227_v16  ;;  %1985 = vmatpush1.bf16.msra.mxu1 %v2240_v30  ;;  %v1139_v30 = vld [vmem:[#allocation4 + $0xd0] sm:$0xff] }
 0x626   :  { %1955 = vmatprep.subr.bf16.mxu0 %v2234_v22  ;;  %1987 = vmatprep.subr.bf16.mxu1 %v2249_v39 }
 0x629   :  { %1957 = vmatpush1.bf16.msra.mxu0 %v2243_v32  ;;  %1989 = vmatpush1.bf16.msra.mxu1 %v2252_v44 }
 0x62a   :  { %1959 = vmatprep.subr.bf16.mxu0 %v2247_v36  ;;  %1991 = vmatprep.subr.bf16.mxu1 %v2258_v48 }
 0x62d   :  { %1961 = vmatpush1.bf16.msra.mxu0 %v2255_v46  ;;  %1993 = vmatpush1.bf16.msra.mxu1 %v2264_v57  ;;  %v1140_v46 = vld [vmem:[#allocation4 + $0xd8] sm:$0xff] }
 0x62e   :  { %1963 = vmatprep.subr.bf16.mxu0 %v2261_v51  ;;  %1995 = vmatprep.subr.bf16.mxu1 %v2270_v60 }
 0x631   :  { %1965 = vmatpush1.bf16.msra.mxu0 %v2267_v58  ;;  %1997 = vmatpush1.bf16.msra.mxu1 %v2276_v7 }
 0x632   :  { %1967 = vmatprep.subr.bf16.mxu0 %v2273_v63  ;;  %1999 = vmatprep.subr.bf16.mxu1 %v2282_v12 }
 0x635   :  { %1969 = vmatpush1.bf16.msra.mxu0 %v2279_v10  ;;  %2001 = vmatpush1.bf16.msra.mxu1 %v2288_v25 }
 0x636   :  { %1971 = vmatprep.subr.bf16.mxu0 %v2285_v15  ;;  %2003 = vmatprep.subr.bf16.mxu1 %v2294_v29 }
 0x639   :  { %1973 = vmatpush1.bf16.msra.mxu0 %v2291_v27  ;;  %2005 = vmatpush1.bf16.msra.mxu1 %v2300_v40 }
 0x63a   :  { %1975 = vmatprep.subr.bf16.mxu0 %v2297_v34  ;;  %2007 = vmatprep.subr.bf16.mxu1 %v2306_v42 }
 0x63d   :  { %1977 = vmatpush1.bf16.msra.mxu0 %v2303_v41  ;;  %2009 = vmatpush1.bf16.msra.mxu1 %v2310_v47  ;;  %v1308_v47 = vld [vmem:[#allocation4 + $0xe0] sm:$0xff] }
 0x6f3   :  { %v1207_v9 = vpop.f32.mrb[12].mxu0  ;;  %v1278_v16 = vpop.f32.mrb[12].mxu1 }
 0x6f4   :  { %v1283_v18 = vadd.f32 %v1207_v9, %v1137_v0  ;;  %v1209_v22 = vpop.f32.mrb[13].mxu0  ;;  %v1280_v26 = vpop.f32.mrb[13].mxu1  ;;  %v1285_v44 = vadd.f32 %v1278_v16, %v1139_v30 }
 0x6f5   :  { %v1284_v32 = vadd.f32 %v1209_v22, %v1138_v8  ;;  %v1286_v48 = vadd.f32 %v1280_v26, %v1140_v46 }
 0x6f6   :  { %v1287_v36 = vmul.f32 0.5, %v1283_v18 }
 0x6f7   :  { %v1291_v39 = vmul.f32 0.5, %v1284_v32  ;;  %v1296_v51 = vmul.f32 0.5, %v1286_v48 }
 0x6f8   :  { %2078 = vtanh.f32 %v1287_v36 }
 0x6f9   :  { %2080 = vtanh.f32 %v1291_v39 }
 0x6fa   :  { %2082 = vtanh.f32 %v1285_v44 }
 0x6fb   :  { %2084 = vtanh.f32 %v1296_v51 }
 0x702   :  { %v2079_v57 = vpop.eup %2078 }
 0x703   :  { %v2081_v58 = vpop.eup %2080  ;;  %v1289_v60 = vadd.f32 1.0, %v2079_v57 }
 0x704   :  { %v1293_v63 = vadd.f32 1.0, %v2081_v58  ;;  %v2083_v10 = vpop.eup %2082 }
 0x705   :  { %v1290_v7 = vmul.f32 0.5, %v1289_v60  ;;  %v2085_v29 = vpop.eup %2084 }
 0x706   :  { %v1294_v12 = vmul.f32 0.5, %v1293_v63  ;;  %v1298_v34 = vadd.f32 1.0, %v2085_v29 }
 0x707   :  { %v1301_v15 = vmul.f32 %v2083_v10, %v1290_v7 }
 0x708   :  { %v1300_v25 = vmul.f32 %v1294_v12, %v2543_v14  ;;  %v1299_v40 = vmul.f32 0.5, %v1298_v34 }
 0x70a   :  { %v1302_v27 = vadd.f32 %v1301_v15, %v1300_v25 }
 0x70c   :  { %2086 = vtanh.f32 %v1302_v27 }
 0x716   :  { %v2087_v41 = vpop.eup %2086 }
 0x717   :  { %v1304_v42 = vmul.f32 %v2087_v41, %v1299_v40 }
 0x719   :  { %1306 = vst [vmem:[#allocation9 + $0x30] sm:$0xff] %v1304_v42  ;;  %1377 = vmatmul.mubr.f32.vlgmr.msra.gmra.mrb[14].mxu0 %v1304_v42  ;;  %1448 = vmatmul.mubr.f32.vlgmr.msra.gmra.mrb[14].mxu1 %v1304_v42 }
 0x7ec   :  { %v1378_v38 = vpop.f32.mrb[14].mxu0  ;;  %v1449_v43 = vpop.f32.mrb[14].mxu1 }
 0x7ed   :  { %v1454_v23 = vadd.f32 %v1378_v38, %v1308_v47  ;;  %v1380_v24 = vpop.f32.mrb[15].mxu0  ;;  %v1451_v28 = vpop.f32.mrb[15].mxu1  ;;  %v1456_v52 = vadd.f32 %v1449_v43, %v1310_v31 }
 0x7ee   :  { %v1455_v45 = vadd.f32 %v1380_v24, %v1309_v21  ;;  %v1457_v54 = vadd.f32 %v1451_v28, %v1311_v53 }
 0x7ef   :  { %v1458_v49 = vmul.f32 0.5, %v1454_v23 }
 0x7f0   :  { %v1462_v50 = vmul.f32 0.5, %v1455_v45  ;;  %v1467_v55 = vmul.f32 0.5, %v1457_v54 }
 0x7f1   :  { %2088 = vtanh.f32 %v1458_v49 }
 0x7f2   :  { %2090 = vtanh.f32 %v1462_v50 }
 0x7f3   :  { %2092 = vtanh.f32 %v1456_v52 }
 0x7f4   :  { %2094 = vtanh.f32 %v1467_v55 }
 0x7fb   :  { %v2089_v56 = vpop.eup %2088 }
 0x7fc   :  { %v2091_v59 = vpop.eup %2090  ;;  %v1460_v61 = vadd.f32 1.0, %v2089_v56 }
 0x7fd   :  { %v1464_v4 = vadd.f32 1.0, %v2091_v59  ;;  %v2093_v17 = vpop.eup %2092 }
 0x7fe   :  { %v1461_v62 = vmul.f32 0.5, %v1460_v61  ;;  %v2095_v6 = vpop.eup %2094 }
 0x7ff   :  { %v1465_v1 = vmul.f32 0.5, %v1464_v4  ;;  %v1469_v11 = vadd.f32 1.0, %v2095_v6 }
 0x800   :  { %v1472_v2 = vmul.f32 %v2093_v17, %v1461_v62 }
 0x801   :  { %v1471_v3 = vmul.f32 %v1465_v1, %v1302_v27  ;;  %v1470_v13 = vmul.f32 0.5, %v1469_v11 }
 0x803   :  { %v1473_v5 = vadd.f32 %v1472_v2, %v1471_v3 }
 0x805   :  { %2096 = vtanh.f32 %v1473_v5 }
 0x80f   :  { %v2097_v14 = vpop.eup %2096 }
 0x810   :  { %v1475_v19 = vmul.f32 %v2097_v14, %v1470_v13 }
 0x812   :  { %1477 = vst [vmem:[#allocation9 + $0x38] sm:$0xff] %v1475_v19 }
 0x813   :  { %2153 = shalt.err (!%p2150_p6)
}
 0x814   :  { %s2154_s10 = scalar_lea.hbm %s2593_s2, 1024 }
 0x815   :  { %p2155_p7 = scmp.ne.s32.totalorder %s2593_s2, %s2154_s10  ;;  %p2158_p8 = scmp.lt.u32.totalorder %s2154_s10, %s2593_s2 }
 0x817   :  { %p2160_p9 = pnand %p2158_p8, %p2155_p7 }
 0x819   :  { %2163 = shalt.err (!%p2160_p9)
}
 0x81a   :  { %s2176_s15 = smov 128   ;;  %s2177_s16 = smov 8  }
 0x81b   :  { %1491 = dma.vmem_to_hbm [thread:$0]  %s1486_s6, 1024, %s2593_s2, [#allocation6], %s2176_s15, %s2176_s15, %s2177_s16  }
 0x81c   :  { %2168 = dma.done.wait [#allocation6], 1024  }
 0x81d   :  { %2169 = vsyncadd [#allocation6], 4294966272 }
 0x81e   :  { %1495 = vsyncpa [#allocation5], 1 }
 0x81f   :  { %1496 = vsyncpa [#allocation8], 1 }
 0x820   :  { %1497 = vsyncpa [#allocation6], 1 }

</bundles_post_ra>
